<compile_context>
chip_gen: v7x
topology: tpu7x:2x2x1
jax: 0.10.0
libtpu: 0.0.40
codegen_flags: <defaults>
</compile_context>

<pallas_src>
import functools

import jax
import jax.numpy as jnp
from jax.experimental import pallas as pl
from jax.experimental.pallas import tpu as pltpu

HIDDEN_DIM = 128
DOF = 7
CHOICE_PARTS = 3
INPUT_DIM = CHOICE_PARTS * DOF          # 21
OUTPUT_DIM = 3                          # len(motions)
NUM_LAYERS = 1

BP = 8                                  # padded batch (sublane multiple)
DOUT_PAD = 128                          # padded output lane width


def _round_up(n, m):
    return ((n + m - 1) // m) * m


def _lstm_fc_kernel(x_ref, wih_ref, whh_ref, b_ref, wfc_ref, bfc_ref,
                    out_ref, xp_ref):
    """Single-layer LSTM over time + final Linear, all in one kernel.

    x_ref   : (S*Bp, Dp)      time-major, rows [t*Bp:(t+1)*Bp] = timestep t
    wih_ref : (Dp, 4H)        W_ih^T, zero-padded contraction (gate order i,f,g,o)
    whh_ref : (H,  4H)        W_hh^T
    b_ref   : (1,  4H)        b_ih + b_hh
    wfc_ref : (H, Dout_pad)   fc.weight^T, zero-padded to lane width
    bfc_ref : (1, Dout_pad)   fc.bias, zero-padded
    out_ref : (Bp, Dout_pad)  padded output tile (wrapper slices to (B, Dout))
    xp_ref  : (S*Bp, 4H)      VMEM scratch for the hoisted input projection
    """
    Bp = out_ref.shape[0]
    S = x_ref.shape[0] // Bp
    H = whh_ref.shape[0]

    # Hoisted input projection + fused bias: one matmul, staged in VMEM so it
    # is not carried as a live value across the unrolled recurrence.
    xp_ref[...] = (jnp.dot(x_ref[...], wih_ref[...],
                           preferred_element_type=jnp.float32)
                   + b_ref[...])                                # (S*Bp, 4H)

    def sigm(v):
        # single-EUP sigmoid: sigmoid(x) == 0.5 * tanh(0.5 * x) + 0.5
        return 0.5 * jnp.tanh(0.5 * v) + 0.5

    # t = 0: h0 == 0 and c0 == 0, so skip the recurrent dot and the f*c term.
    g0 = xp_ref[0:Bp, :]
    i = sigm(g0[:, 0 * H:1 * H])
    g = jnp.tanh(g0[:, 2 * H:3 * H])
    o = sigm(g0[:, 3 * H:4 * H])
    c = i * g
    h = o * jnp.tanh(c)

    # Fully unrolled recurrence for t = 1..S-1 (S is small & static). W_hh is
    # re-read from VMEM each step so loads stay adjacent to their MXU use and
    # the loop-carried h/c never spill.
    for t in range(1, S):
        gates = (xp_ref[t * Bp:(t + 1) * Bp, :]
                 + jnp.dot(h, whh_ref[...],
                           preferred_element_type=jnp.float32))  # (Bp, 4H)
        i = sigm(gates[:, 0 * H:1 * H])
        f = sigm(gates[:, 1 * H:2 * H])
        g = jnp.tanh(gates[:, 2 * H:3 * H])
        o = sigm(gates[:, 3 * H:4 * H])
        c = f * c + i * g
        h = o * jnp.tanh(c)

    out_ref[...] = (jnp.dot(h, wfc_ref[...],
                            preferred_element_type=jnp.float32)
                    + bfc_ref[...]).astype(out_ref.dtype)


def prepare_params(params):
    """One-time layout pass: transpose, fuse biases, pad to kernel layout.

    Run this once at model-load time; its outputs are the per-call kernel
    params. Nothing here should execute on the forward path.
    """
    w_ih, w_hh, b_ih, b_hh, w_fc, b_fc = (
        params["w_ih"], params["w_hh"], params["b_ih"],
        params["b_hh"], params["w_fc"], params["b_fc"])
    H = w_hh.shape[1]
    Din = w_ih.shape[1]
    Dout = w_fc.shape[0]
    Din_pad = _round_up(max(Din, 8), 8)

    wih_t = jnp.transpose(w_ih).astype(jnp.float32)                 # (Din, 4H)
    wih_t = jnp.pad(wih_t, ((0, Din_pad - Din), (0, 0)))            # (Dp, 4H)
    whh_t = jnp.transpose(w_hh).astype(jnp.float32)                 # (H, 4H)
    b = (b_ih + b_hh).reshape(1, 4 * H).astype(jnp.float32)         # (1, 4H)
    wfc_t = jnp.pad(jnp.transpose(w_fc).astype(jnp.float32),
                    ((0, 0), (0, DOUT_PAD - Dout)))                 # (H, 128)
    bfc = jnp.pad(b_fc.reshape(1, Dout).astype(jnp.float32),
                  ((0, 0), (0, DOUT_PAD - Dout)))                   # (1, 128)

    return {"wih_t": wih_t, "whh_t": whh_t, "b": b,
            "wfc_t": wfc_t, "bfc": bfc}


@functools.partial(jax.jit, static_argnames=("dout",))
def lstm_model_forward(x, kparams, dout=OUTPUT_DIM):
    """x: (batch, seq, input_dim) float32 — same semantics as LSTMModel.forward.

    kparams must come from prepare_params (kernel-layout weights).
    """
    B, S, Din = x.shape
    H = kparams["whh_t"].shape[0]
    Din_pad = kparams["wih_t"].shape[0]
    Bp = _round_up(max(B, BP), BP)

    # Lightweight per-call input staging; fuses with the launch under jit.
    x_tm = jnp.transpose(x, (1, 0, 2)).astype(jnp.float32)          # (S, B, Din)
    x_tm = jnp.pad(x_tm, ((0, 0), (0, Bp - B), (0, Din_pad - Din))) # (S, Bp, Dp)
    x2d = x_tm.reshape(S * Bp, Din_pad)                             # (S*Bp, Dp)

    vmem = pl.BlockSpec(memory_space=pltpu.MemorySpace.VMEM)
    out_pad = pl.pallas_call(
        _lstm_fc_kernel,
        out_shape=jax.ShapeDtypeStruct((Bp, DOUT_PAD), jnp.float32),
        in_specs=[vmem] * 6,
        out_specs=vmem,
        scratch_shapes=[pltpu.VMEM((S * Bp, 4 * H), jnp.float32)],
    )(x2d, kparams["wih_t"], kparams["whh_t"], kparams["b"],
      kparams["wfc_t"], kparams["bfc"])
    return out_pad[:B, :dout]


def _reference_forward(x, params):
    """Pure-JAX reference matching torch.nn.LSTM + Linear semantics."""
    w_ih, w_hh, b_ih, b_hh, w_fc, b_fc = (
        params["w_ih"], params["w_hh"], params["b_ih"],
        params["b_hh"], params["w_fc"], params["b_fc"])
    B, S, _ = x.shape
    H = w_hh.shape[1]
    h = jnp.zeros((B, H), jnp.float32)
    c = jnp.zeros((B, H), jnp.float32)
    for t in range(S):
        gates = x[:, t, :] @ w_ih.T + b_ih + h @ w_hh.T + b_hh
        i = jax.nn.sigmoid(gates[:, 0 * H:1 * H])
        f = jax.nn.sigmoid(gates[:, 1 * H:2 * H])
        g = jnp.tanh(gates[:, 2 * H:3 * H])
        o = jax.nn.sigmoid(gates[:, 3 * H:4 * H])
        c = f * c + i * g
        h = o * jnp.tanh(c)
    return h @ w_fc.T + b_fc


def init_params(key, input_dim, hidden_dim, output_dim):
    """Deterministic init mimicking PyTorch's uniform(-1/sqrt(H), 1/sqrt(H))."""
    ks = jax.random.split(key, 6)
    bound = 1.0 / jnp.sqrt(hidden_dim)

    def u(k, shape, b):
        return jax.random.uniform(k, shape, jnp.float32, minval=-b, maxval=b)

    fc_bound = 1.0 / jnp.sqrt(hidden_dim)
    return {
        "w_ih": u(ks[0], (4 * hidden_dim, input_dim), bound),
        "w_hh": u(ks[1], (4 * hidden_dim, hidden_dim), bound),
        "b_ih": u(ks[2], (4 * hidden_dim,), bound),
        "b_hh": u(ks[3], (4 * hidden_dim,), bound),
        "w_fc": u(ks[4], (output_dim, hidden_dim), fc_bound),
        "b_fc": u(ks[5], (output_dim,), fc_bound),
    }


if __name__ == "__main__":
    key = jax.random.PRNGKey(0)
    k_params, k_x = jax.random.split(key)

    batch, seq = 2, 8
    params = init_params(k_params, INPUT_DIM, HIDDEN_DIM, OUTPUT_DIM)
    x = jax.random.normal(k_x, (batch, seq, INPUT_DIM), jnp.float32)

    # One-time weight layout pass (off the per-call forward path).
    kparams = jax.block_until_ready(prepare_params(params))

    out = lstm_model_forward(x, kparams)
    out = jax.block_until_ready(out)

    ref = _reference_forward(x, params)
    assert out.shape == (batch, OUTPUT_DIM)
    # tanh-based sigmoid differs from jax.nn.sigmoid only at float rounding
    # level; keep a slightly relaxed tolerance.
    assert jnp.allclose(out, ref, atol=1e-4, rtol=1e-4), "mismatch vs reference"

    print("KERNEL_OK")
</pallas_src>

<mosaic_0001>
module attributes {stable_mosaic.version = 11 : i64} {
  func.func @_lstm_fc_kernel(%arg0: memref<64x24xf32, #tpu.memory_space<vmem>>, %arg1: memref<24x512xf32, #tpu.memory_space<vmem>>, %arg2: memref<128x512xf32, #tpu.memory_space<vmem>>, %arg3: memref<1x512xf32, #tpu.memory_space<vmem>>, %arg4: memref<128x128xf32, #tpu.memory_space<vmem>>, %arg5: memref<1x128xf32, #tpu.memory_space<vmem>>, %arg6: memref<8x128xf32, #tpu.memory_space<vmem>>, %arg7: memref<64x512xf32, #tpu.memory_space<vmem>>) attributes {dimension_semantics = [], scalar_prefetch = 0 : i64, scratch_operands = 1 : i64, tpu.core_type = #tpu.core_type<tc>} {
    %c0 = arith.constant 0 : index
    %c0_0 = arith.constant 0 : index
    %0 = vector.load %arg0[%c0, %c0_0] : memref<64x24xf32, #tpu.memory_space<vmem>>, vector<64x24xf32>
    %c0_1 = arith.constant 0 : index
    %c0_2 = arith.constant 0 : index
    %1 = vector.load %arg1[%c0_1, %c0_2] : memref<24x512xf32, #tpu.memory_space<vmem>>, vector<24x512xf32>
    %cst = arith.constant dense<0.000000e+00> : vector<64x512xf32>
    %2 = tpu.matmul %0, %1, %cst {dimension_numbers = #tpu.dot_dimension_numbers<[1], [0], [0], [1], [0, 0, 1, 1], [], []>} : vector<64x24xf32>, vector<24x512xf32>, vector<64x512xf32> -> vector<64x512xf32>
    %c0_3 = arith.constant 0 : index
    %c0_4 = arith.constant 0 : index
    %3 = vector.load %arg3[%c0_3, %c0_4] : memref<1x512xf32, #tpu.memory_space<vmem>>, vector<1x512xf32>
    %4 = vector.broadcast %3 : vector<1x512xf32> to vector<64x512xf32>
    %5 = arith.addf %2, %4 : vector<64x512xf32>
    %c0_5 = arith.constant 0 : index
    %c0_6 = arith.constant 0 : index
    %6 = vector.load %arg7[%c0_5, %c0_6] : memref<64x512xf32, #tpu.memory_space<vmem>>, vector<64x512xf32>
    tpu.vector_store %arg7[%c0_5, %c0_6], %5 {strides = array<i32>} : memref<64x512xf32, #tpu.memory_space<vmem>>, vector<64x512xf32>,
    %c0_7 = arith.constant 0 : index
    %c0_8 = arith.constant 0 : index
    %7 = vector.load %arg7[%c0_7, %c0_8] : memref<64x512xf32, #tpu.memory_space<vmem>>, vector<8x512xf32>
    %8 = vector.extract_strided_slice %7 {offsets = [0, 0], sizes = [8, 128], strides = [1, 1]} : vector<8x512xf32> to vector<8x128xf32>
    %cst_9 = arith.constant 5.000000e-01 : f32
    %9 = vector.broadcast %cst_9 : f32 to vector<8x128xf32>
    %10 = arith.mulf %9, %8 : vector<8x128xf32>
    %11 = math.tanh %10 : vector<8x128xf32>
    %cst_10 = arith.constant 5.000000e-01 : f32
    %12 = vector.broadcast %cst_10 : f32 to vector<8x128xf32>
    %13 = arith.mulf %12, %11 : vector<8x128xf32>
    %cst_11 = arith.constant 5.000000e-01 : f32
    %14 = vector.broadcast %cst_11 : f32 to vector<8x128xf32>
    %15 = arith.addf %13, %14 : vector<8x128xf32>
    %16 = vector.extract_strided_slice %7 {offsets = [0, 256], sizes = [8, 128], strides = [1, 1]} : vector<8x512xf32> to vector<8x128xf32>
    %17 = math.tanh %16 : vector<8x128xf32>
    %18 = vector.extract_strided_slice %7 {offsets = [0, 384], sizes = [8, 128], strides = [1, 1]} : vector<8x512xf32> to vector<8x128xf32>
    %cst_12 = arith.constant 5.000000e-01 : f32
    %19 = vector.broadcast %cst_12 : f32 to vector<8x128xf32>
    %20 = arith.mulf %19, %18 : vector<8x128xf32>
    %21 = math.tanh %20 : vector<8x128xf32>
    %cst_13 = arith.constant 5.000000e-01 : f32
    %22 = vector.broadcast %cst_13 : f32 to vector<8x128xf32>
    %23 = arith.mulf %22, %21 : vector<8x128xf32>
    %cst_14 = arith.constant 5.000000e-01 : f32
    %24 = vector.broadcast %cst_14 : f32 to vector<8x128xf32>
    %25 = arith.addf %23, %24 : vector<8x128xf32>
    %26 = arith.mulf %15, %17 : vector<8x128xf32>
    %27 = math.tanh %26 : vector<8x128xf32>
    %28 = arith.mulf %25, %27 : vector<8x128xf32>
    %c8 = arith.constant 8 : index
    %c0_15 = arith.constant 0 : index
    %29 = vector.load %arg7[%c8, %c0_15] : memref<64x512xf32, #tpu.memory_space<vmem>>, vector<8x512xf32>
    %c0_16 = arith.constant 0 : index
    %c0_17 = arith.constant 0 : index
    %30 = vector.load %arg2[%c0_16, %c0_17] : memref<128x512xf32, #tpu.memory_space<vmem>>, vector<128x512xf32>
    %cst_18 = arith.constant dense<0.000000e+00> : vector<8x512xf32>
    %31 = tpu.matmul %28, %30, %cst_18 {dimension_numbers = #tpu.dot_dimension_numbers<[1], [0], [0], [1], [0, 0, 1, 1], [], []>} : vector<8x128xf32>, vector<128x512xf32>, vector<8x512xf32> -> vector<8x512xf32>
    %32 = arith.addf %29, %31 : vector<8x512xf32>
    %33 = vector.extract_strided_slice %32 {offsets = [0, 0], sizes = [8, 128], strides = [1, 1]} : vector<8x512xf32> to vector<8x128xf32>
    %cst_19 = arith.constant 5.000000e-01 : f32
    %34 = vector.broadcast %cst_19 : f32 to vector<8x128xf32>
    %35 = arith.mulf %34, %33 : vector<8x128xf32>
    %36 = math.tanh %35 : vector<8x128xf32>
    %cst_20 = arith.constant 5.000000e-01 : f32
    %37 = vector.broadcast %cst_20 : f32 to vector<8x128xf32>
    %38 = arith.mulf %37, %36 : vector<8x128xf32>
    %cst_21 = arith.constant 5.000000e-01 : f32
    %39 = vector.broadcast %cst_21 : f32 to vector<8x128xf32>
    %40 = arith.addf %38, %39 : vector<8x128xf32>
    %41 = vector.extract_strided_slice %32 {offsets = [0, 128], sizes = [8, 128], strides = [1, 1]} : vector<8x512xf32> to vector<8x128xf32>
    %cst_22 = arith.constant 5.000000e-01 : f32
    %42 = vector.broadcast %cst_22 : f32 to vector<8x128xf32>
    %43 = arith.mulf %42, %41 : vector<8x128xf32>
    %44 = math.tanh %43 : vector<8x128xf32>
    %cst_23 = arith.constant 5.000000e-01 : f32
    %45 = vector.broadcast %cst_23 : f32 to vector<8x128xf32>
    %46 = arith.mulf %45, %44 : vector<8x128xf32>
    %cst_24 = arith.constant 5.000000e-01 : f32
    %47 = vector.broadcast %cst_24 : f32 to vector<8x128xf32>
    %48 = arith.addf %46, %47 : vector<8x128xf32>
    %49 = vector.extract_strided_slice %32 {offsets = [0, 256], sizes = [8, 128], strides = [1, 1]} : vector<8x512xf32> to vector<8x128xf32>
    %50 = math.tanh %49 : vector<8x128xf32>
    %51 = vector.extract_strided_slice %32 {offsets = [0, 384], sizes = [8, 128], strides = [1, 1]} : vector<8x512xf32> to vector<8x128xf32>
    %cst_25 = arith.constant 5.000000e-01 : f32
    %52 = vector.broadcast %cst_25 : f32 to vector<8x128xf32>
    %53 = arith.mulf %52, %51 : vector<8x128xf32>
    %54 = math.tanh %53 : vector<8x128xf32>
    %cst_26 = arith.constant 5.000000e-01 : f32
    %55 = vector.broadcast %cst_26 : f32 to vector<8x128xf32>
    %56 = arith.mulf %55, %54 : vector<8x128xf32>
    %cst_27 = arith.constant 5.000000e-01 : f32
    %57 = vector.broadcast %cst_27 : f32 to vector<8x128xf32>
    %58 = arith.addf %56, %57 : vector<8x128xf32>
    %59 = arith.mulf %48, %26 : vector<8x128xf32>
    %60 = arith.mulf %40, %50 : vector<8x128xf32>
    %61 = arith.addf %59, %60 : vector<8x128xf32>
    %62 = math.tanh %61 : vector<8x128xf32>
    %63 = arith.mulf %58, %62 : vector<8x128xf32>
    %c16 = arith.constant 16 : index
    %c0_28 = arith.constant 0 : index
    %64 = vector.load %arg7[%c16, %c0_28] : memref<64x512xf32, #tpu.memory_space<vmem>>, vector<8x512xf32>
    %c0_29 = arith.constant 0 : index
    %c0_30 = arith.constant 0 : index
    %65 = vector.load %arg2[%c0_29, %c0_30] : memref<128x512xf32, #tpu.memory_space<vmem>>, vector<128x512xf32>
    %cst_31 = arith.constant dense<0.000000e+00> : vector<8x512xf32>
    %66 = tpu.matmul %63, %65, %cst_31 {dimension_numbers = #tpu.dot_dimension_numbers<[1], [0], [0], [1], [0, 0, 1, 1], [], []>} : vector<8x128xf32>, vector<128x512xf32>, vector<8x512xf32> -> vector<8x512xf32>
    %67 = arith.addf %64, %66 : vector<8x512xf32>
    %68 = vector.extract_strided_slice %67 {offsets = [0, 0], sizes = [8, 128], strides = [1, 1]} : vector<8x512xf32> to vector<8x128xf32>
    %cst_32 = arith.constant 5.000000e-01 : f32
    %69 = vector.broadcast %cst_32 : f32 to vector<8x128xf32>
    %70 = arith.mulf %69, %68 : vector<8x128xf32>
    %71 = math.tanh %70 : vector<8x128xf32>
    %cst_33 = arith.constant 5.000000e-01 : f32
    %72 = vector.broadcast %cst_33 : f32 to vector<8x128xf32>
    %73 = arith.mulf %72, %71 : vector<8x128xf32>
    %cst_34 = arith.constant 5.000000e-01 : f32
    %74 = vector.broadcast %cst_34 : f32 to vector<8x128xf32>
    %75 = arith.addf %73, %74 : vector<8x128xf32>
    %76 = vector.extract_strided_slice %67 {offsets = [0, 128], sizes = [8, 128], strides = [1, 1]} : vector<8x512xf32> to vector<8x128xf32>
    %cst_35 = arith.constant 5.000000e-01 : f32
    %77 = vector.broadcast %cst_35 : f32 to vector<8x128xf32>
    %78 = arith.mulf %77, %76 : vector<8x128xf32>
    %79 = math.tanh %78 : vector<8x128xf32>
    %cst_36 = arith.constant 5.000000e-01 : f32
    %80 = vector.broadcast %cst_36 : f32 to vector<8x128xf32>
    %81 = arith.mulf %80, %79 : vector<8x128xf32>
    %cst_37 = arith.constant 5.000000e-01 : f32
    %82 = vector.broadcast %cst_37 : f32 to vector<8x128xf32>
    %83 = arith.addf %81, %82 : vector<8x128xf32>
    %84 = vector.extract_strided_slice %67 {offsets = [0, 256], sizes = [8, 128], strides = [1, 1]} : vector<8x512xf32> to vector<8x128xf32>
    %85 = math.tanh %84 : vector<8x128xf32>
    %86 = vector.extract_strided_slice %67 {offsets = [0, 384], sizes = [8, 128], strides = [1, 1]} : vector<8x512xf32> to vector<8x128xf32>
    %cst_38 = arith.constant 5.000000e-01 : f32
    %87 = vector.broadcast %cst_38 : f32 to vector<8x128xf32>
    %88 = arith.mulf %87, %86 : vector<8x128xf32>
    %89 = math.tanh %88 : vector<8x128xf32>
    %cst_39 = arith.constant 5.000000e-01 : f32
    %90 = vector.broadcast %cst_39 : f32 to vector<8x128xf32>
    %91 = arith.mulf %90, %89 : vector<8x128xf32>
    %cst_40 = arith.constant 5.000000e-01 : f32
    %92 = vector.broadcast %cst_40 : f32 to vector<8x128xf32>
    %93 = arith.addf %91, %92 : vector<8x128xf32>
    %94 = arith.mulf %83, %61 : vector<8x128xf32>
    %95 = arith.mulf %75, %85 : vector<8x128xf32>
    %96 = arith.addf %94, %95 : vector<8x128xf32>
    %97 = math.tanh %96 : vector<8x128xf32>
    %98 = arith.mulf %93, %97 : vector<8x128xf32>
    %c24 = arith.constant 24 : index
    %c0_41 = arith.constant 0 : index
    %99 = vector.load %arg7[%c24, %c0_41] : memref<64x512xf32, #tpu.memory_space<vmem>>, vector<8x512xf32>
    %c0_42 = arith.constant 0 : index
    %c0_43 = arith.constant 0 : index
    %100 = vector.load %arg2[%c0_42, %c0_43] : memref<128x512xf32, #tpu.memory_space<vmem>>, vector<128x512xf32>
    %cst_44 = arith.constant dense<0.000000e+00> : vector<8x512xf32>
    %101 = tpu.matmul %98, %100, %cst_44 {dimension_numbers = #tpu.dot_dimension_numbers<[1], [0], [0], [1], [0, 0, 1, 1], [], []>} : vector<8x128xf32>, vector<128x512xf32>, vector<8x512xf32> -> vector<8x512xf32>
    %102 = arith.addf %99, %101 : vector<8x512xf32>
    %103 = vector.extract_strided_slice %102 {offsets = [0, 0], sizes = [8, 128], strides = [1, 1]} : vector<8x512xf32> to vector<8x128xf32>
    %cst_45 = arith.constant 5.000000e-01 : f32
    %104 = vector.broadcast %cst_45 : f32 to vector<8x128xf32>
    %105 = arith.mulf %104, %103 : vector<8x128xf32>
    %106 = math.tanh %105 : vector<8x128xf32>
    %cst_46 = arith.constant 5.000000e-01 : f32
    %107 = vector.broadcast %cst_46 : f32 to vector<8x128xf32>
    %108 = arith.mulf %107, %106 : vector<8x128xf32>
    %cst_47 = arith.constant 5.000000e-01 : f32
    %109 = vector.broadcast %cst_47 : f32 to vector<8x128xf32>
    %110 = arith.addf %108, %109 : vector<8x128xf32>
    %111 = vector.extract_strided_slice %102 {offsets = [0, 128], sizes = [8, 128], strides = [1, 1]} : vector<8x512xf32> to vector<8x128xf32>
    %cst_48 = arith.constant 5.000000e-01 : f32
    %112 = vector.broadcast %cst_48 : f32 to vector<8x128xf32>
    %113 = arith.mulf %112, %111 : vector<8x128xf32>
    %114 = math.tanh %113 : vector<8x128xf32>
    %cst_49 = arith.constant 5.000000e-01 : f32
    %115 = vector.broadcast %cst_49 : f32 to vector<8x128xf32>
    %116 = arith.mulf %115, %114 : vector<8x128xf32>
    %cst_50 = arith.constant 5.000000e-01 : f32
    %117 = vector.broadcast %cst_50 : f32 to vector<8x128xf32>
    %118 = arith.addf %116, %117 : vector<8x128xf32>
    %119 = vector.extract_strided_slice %102 {offsets = [0, 256], sizes = [8, 128], strides = [1, 1]} : vector<8x512xf32> to vector<8x128xf32>
    %120 = math.tanh %119 : vector<8x128xf32>
    %121 = vector.extract_strided_slice %102 {offsets = [0, 384], sizes = [8, 128], strides = [1, 1]} : vector<8x512xf32> to vector<8x128xf32>
    %cst_51 = arith.constant 5.000000e-01 : f32
    %122 = vector.broadcast %cst_51 : f32 to vector<8x128xf32>
    %123 = arith.mulf %122, %121 : vector<8x128xf32>
    %124 = math.tanh %123 : vector<8x128xf32>
    %cst_52 = arith.constant 5.000000e-01 : f32
    %125 = vector.broadcast %cst_52 : f32 to vector<8x128xf32>
    %126 = arith.mulf %125, %124 : vector<8x128xf32>
    %cst_53 = arith.constant 5.000000e-01 : f32
    %127 = vector.broadcast %cst_53 : f32 to vector<8x128xf32>
    %128 = arith.addf %126, %127 : vector<8x128xf32>
    %129 = arith.mulf %118, %96 : vector<8x128xf32>
    %130 = arith.mulf %110, %120 : vector<8x128xf32>
    %131 = arith.addf %129, %130 : vector<8x128xf32>
    %132 = math.tanh %131 : vector<8x128xf32>
    %133 = arith.mulf %128, %132 : vector<8x128xf32>
    %c32 = arith.constant 32 : index
    %c0_54 = arith.constant 0 : index
    %134 = vector.load %arg7[%c32, %c0_54] : memref<64x512xf32, #tpu.memory_space<vmem>>, vector<8x512xf32>
    %c0_55 = arith.constant 0 : index
    %c0_56 = arith.constant 0 : index
    %135 = vector.load %arg2[%c0_55, %c0_56] : memref<128x512xf32, #tpu.memory_space<vmem>>, vector<128x512xf32>
    %cst_57 = arith.constant dense<0.000000e+00> : vector<8x512xf32>
    %136 = tpu.matmul %133, %135, %cst_57 {dimension_numbers = #tpu.dot_dimension_numbers<[1], [0], [0], [1], [0, 0, 1, 1], [], []>} : vector<8x128xf32>, vector<128x512xf32>, vector<8x512xf32> -> vector<8x512xf32>
    %137 = arith.addf %134, %136 : vector<8x512xf32>
    %138 = vector.extract_strided_slice %137 {offsets = [0, 0], sizes = [8, 128], strides = [1, 1]} : vector<8x512xf32> to vector<8x128xf32>
    %cst_58 = arith.constant 5.000000e-01 : f32
    %139 = vector.broadcast %cst_58 : f32 to vector<8x128xf32>
    %140 = arith.mulf %139, %138 : vector<8x128xf32>
    %141 = math.tanh %140 : vector<8x128xf32>
    %cst_59 = arith.constant 5.000000e-01 : f32
    %142 = vector.broadcast %cst_59 : f32 to vector<8x128xf32>
    %143 = arith.mulf %142, %141 : vector<8x128xf32>
    %cst_60 = arith.constant 5.000000e-01 : f32
    %144 = vector.broadcast %cst_60 : f32 to vector<8x128xf32>
    %145 = arith.addf %143, %144 : vector<8x128xf32>
    %146 = vector.extract_strided_slice %137 {offsets = [0, 128], sizes = [8, 128], strides = [1, 1]} : vector<8x512xf32> to vector<8x128xf32>
    %cst_61 = arith.constant 5.000000e-01 : f32
    %147 = vector.broadcast %cst_61 : f32 to vector<8x128xf32>
    %148 = arith.mulf %147, %146 : vector<8x128xf32>
    %149 = math.tanh %148 : vector<8x128xf32>
    %cst_62 = arith.constant 5.000000e-01 : f32
    %150 = vector.broadcast %cst_62 : f32 to vector<8x128xf32>
    %151 = arith.mulf %150, %149 : vector<8x128xf32>
    %cst_63 = arith.constant 5.000000e-01 : f32
    %152 = vector.broadcast %cst_63 : f32 to vector<8x128xf32>
    %153 = arith.addf %151, %152 : vector<8x128xf32>
    %154 = vector.extract_strided_slice %137 {offsets = [0, 256], sizes = [8, 128], strides = [1, 1]} : vector<8x512xf32> to vector<8x128xf32>
    %155 = math.tanh %154 : vector<8x128xf32>
    %156 = vector.extract_strided_slice %137 {offsets = [0, 384], sizes = [8, 128], strides = [1, 1]} : vector<8x512xf32> to vector<8x128xf32>
    %cst_64 = arith.constant 5.000000e-01 : f32
    %157 = vector.broadcast %cst_64 : f32 to vector<8x128xf32>
    %158 = arith.mulf %157, %156 : vector<8x128xf32>
    %159 = math.tanh %158 : vector<8x128xf32>
    %cst_65 = arith.constant 5.000000e-01 : f32
    %160 = vector.broadcast %cst_65 : f32 to vector<8x128xf32>
    %161 = arith.mulf %160, %159 : vector<8x128xf32>
    %cst_66 = arith.constant 5.000000e-01 : f32
    %162 = vector.broadcast %cst_66 : f32 to vector<8x128xf32>
    %163 = arith.addf %161, %162 : vector<8x128xf32>
    %164 = arith.mulf %153, %131 : vector<8x128xf32>
    %165 = arith.mulf %145, %155 : vector<8x128xf32>
    %166 = arith.addf %164, %165 : vector<8x128xf32>
    %167 = math.tanh %166 : vector<8x128xf32>
    %168 = arith.mulf %163, %167 : vector<8x128xf32>
    %c40 = arith.constant 40 : index
    %c0_67 = arith.constant 0 : index
    %169 = vector.load %arg7[%c40, %c0_67] : memref<64x512xf32, #tpu.memory_space<vmem>>, vector<8x512xf32>
    %c0_68 = arith.constant 0 : index
    %c0_69 = arith.constant 0 : index
    %170 = vector.load %arg2[%c0_68, %c0_69] : memref<128x512xf32, #tpu.memory_space<vmem>>, vector<128x512xf32>
    %cst_70 = arith.constant dense<0.000000e+00> : vector<8x512xf32>
    %171 = tpu.matmul %168, %170, %cst_70 {dimension_numbers = #tpu.dot_dimension_numbers<[1], [0], [0], [1], [0, 0, 1, 1], [], []>} : vector<8x128xf32>, vector<128x512xf32>, vector<8x512xf32> -> vector<8x512xf32>
    %172 = arith.addf %169, %171 : vector<8x512xf32>
    %173 = vector.extract_strided_slice %172 {offsets = [0, 0], sizes = [8, 128], strides = [1, 1]} : vector<8x512xf32> to vector<8x128xf32>
    %cst_71 = arith.constant 5.000000e-01 : f32
    %174 = vector.broadcast %cst_71 : f32 to vector<8x128xf32>
    %175 = arith.mulf %174, %173 : vector<8x128xf32>
    %176 = math.tanh %175 : vector<8x128xf32>
    %cst_72 = arith.constant 5.000000e-01 : f32
    %177 = vector.broadcast %cst_72 : f32 to vector<8x128xf32>
    %178 = arith.mulf %177, %176 : vector<8x128xf32>
    %cst_73 = arith.constant 5.000000e-01 : f32
    %179 = vector.broadcast %cst_73 : f32 to vector<8x128xf32>
    %180 = arith.addf %178, %179 : vector<8x128xf32>
    %181 = vector.extract_strided_slice %172 {offsets = [0, 128], sizes = [8, 128], strides = [1, 1]} : vector<8x512xf32> to vector<8x128xf32>
    %cst_74 = arith.constant 5.000000e-01 : f32
    %182 = vector.broadcast %cst_74 : f32 to vector<8x128xf32>
    %183 = arith.mulf %182, %181 : vector<8x128xf32>
    %184 = math.tanh %183 : vector<8x128xf32>
    %cst_75 = arith.constant 5.000000e-01 : f32
    %185 = vector.broadcast %cst_75 : f32 to vector<8x128xf32>
    %186 = arith.mulf %185, %184 : vector<8x128xf32>
    %cst_76 = arith.constant 5.000000e-01 : f32
    %187 = vector.broadcast %cst_76 : f32 to vector<8x128xf32>
    %188 = arith.addf %186, %187 : vector<8x128xf32>
    %189 = vector.extract_strided_slice %172 {offsets = [0, 256], sizes = [8, 128], strides = [1, 1]} : vector<8x512xf32> to vector<8x128xf32>
    %190 = math.tanh %189 : vector<8x128xf32>
    %191 = vector.extract_strided_slice %172 {offsets = [0, 384], sizes = [8, 128], strides = [1, 1]} : vector<8x512xf32> to vector<8x128xf32>
    %cst_77 = arith.constant 5.000000e-01 : f32
    %192 = vector.broadcast %cst_77 : f32 to vector<8x128xf32>
    %193 = arith.mulf %192, %191 : vector<8x128xf32>
    %194 = math.tanh %193 : vector<8x128xf32>
    %cst_78 = arith.constant 5.000000e-01 : f32
    %195 = vector.broadcast %cst_78 : f32 to vector<8x128xf32>
    %196 = arith.mulf %195, %194 : vector<8x128xf32>
    %cst_79 = arith.constant 5.000000e-01 : f32
    %197 = vector.broadcast %cst_79 : f32 to vector<8x128xf32>
    %198 = arith.addf %196, %197 : vector<8x128xf32>
    %199 = arith.mulf %188, %166 : vector<8x128xf32>
    %200 = arith.mulf %180, %190 : vector<8x128xf32>
    %201 = arith.addf %199, %200 : vector<8x128xf32>
    %202 = math.tanh %201 : vector<8x128xf32>
    %203 = arith.mulf %198, %202 : vector<8x128xf32>
    %c48 = arith.constant 48 : index
    %c0_80 = arith.constant 0 : index
    %204 = vector.load %arg7[%c48, %c0_80] : memref<64x512xf32, #tpu.memory_space<vmem>>, vector<8x512xf32>
    %c0_81 = arith.constant 0 : index
    %c0_82 = arith.constant 0 : index
    %205 = vector.load %arg2[%c0_81, %c0_82] : memref<128x512xf32, #tpu.memory_space<vmem>>, vector<128x512xf32>
    %cst_83 = arith.constant dense<0.000000e+00> : vector<8x512xf32>
    %206 = tpu.matmul %203, %205, %cst_83 {dimension_numbers = #tpu.dot_dimension_numbers<[1], [0], [0], [1], [0, 0, 1, 1], [], []>} : vector<8x128xf32>, vector<128x512xf32>, vector<8x512xf32> -> vector<8x512xf32>
    %207 = arith.addf %204, %206 : vector<8x512xf32>
    %208 = vector.extract_strided_slice %207 {offsets = [0, 0], sizes = [8, 128], strides = [1, 1]} : vector<8x512xf32> to vector<8x128xf32>
    %cst_84 = arith.constant 5.000000e-01 : f32
    %209 = vector.broadcast %cst_84 : f32 to vector<8x128xf32>
    %210 = arith.mulf %209, %208 : vector<8x128xf32>
    %211 = math.tanh %210 : vector<8x128xf32>
    %cst_85 = arith.constant 5.000000e-01 : f32
    %212 = vector.broadcast %cst_85 : f32 to vector<8x128xf32>
    %213 = arith.mulf %212, %211 : vector<8x128xf32>
    %cst_86 = arith.constant 5.000000e-01 : f32
    %214 = vector.broadcast %cst_86 : f32 to vector<8x128xf32>
    %215 = arith.addf %213, %214 : vector<8x128xf32>
    %216 = vector.extract_strided_slice %207 {offsets = [0, 128], sizes = [8, 128], strides = [1, 1]} : vector<8x512xf32> to vector<8x128xf32>
    %cst_87 = arith.constant 5.000000e-01 : f32
    %217 = vector.broadcast %cst_87 : f32 to vector<8x128xf32>
    %218 = arith.mulf %217, %216 : vector<8x128xf32>
    %219 = math.tanh %218 : vector<8x128xf32>
    %cst_88 = arith.constant 5.000000e-01 : f32
    %220 = vector.broadcast %cst_88 : f32 to vector<8x128xf32>
    %221 = arith.mulf %220, %219 : vector<8x128xf32>
    %cst_89 = arith.constant 5.000000e-01 : f32
    %222 = vector.broadcast %cst_89 : f32 to vector<8x128xf32>
    %223 = arith.addf %221, %222 : vector<8x128xf32>
    %224 = vector.extract_strided_slice %207 {offsets = [0, 256], sizes = [8, 128], strides = [1, 1]} : vector<8x512xf32> to vector<8x128xf32>
    %225 = math.tanh %224 : vector<8x128xf32>
    %226 = vector.extract_strided_slice %207 {offsets = [0, 384], sizes = [8, 128], strides = [1, 1]} : vector<8x512xf32> to vector<8x128xf32>
    %cst_90 = arith.constant 5.000000e-01 : f32
    %227 = vector.broadcast %cst_90 : f32 to vector<8x128xf32>
    %228 = arith.mulf %227, %226 : vector<8x128xf32>
    %229 = math.tanh %228 : vector<8x128xf32>
    %cst_91 = arith.constant 5.000000e-01 : f32
    %230 = vector.broadcast %cst_91 : f32 to vector<8x128xf32>
    %231 = arith.mulf %230, %229 : vector<8x128xf32>
    %cst_92 = arith.constant 5.000000e-01 : f32
    %232 = vector.broadcast %cst_92 : f32 to vector<8x128xf32>
    %233 = arith.addf %231, %232 : vector<8x128xf32>
    %234 = arith.mulf %223, %201 : vector<8x128xf32>
    %235 = arith.mulf %215, %225 : vector<8x128xf32>
    %236 = arith.addf %234, %235 : vector<8x128xf32>
    %237 = math.tanh %236 : vector<8x128xf32>
    %238 = arith.mulf %233, %237 : vector<8x128xf32>
    %c56 = arith.constant 56 : index
    %c0_93 = arith.constant 0 : index
    %239 = vector.load %arg7[%c56, %c0_93] : memref<64x512xf32, #tpu.memory_space<vmem>>, vector<8x512xf32>
    %c0_94 = arith.constant 0 : index
    %c0_95 = arith.constant 0 : index
    %240 = vector.load %arg2[%c0_94, %c0_95] : memref<128x512xf32, #tpu.memory_space<vmem>>, vector<128x512xf32>
    %cst_96 = arith.constant dense<0.000000e+00> : vector<8x512xf32>
    %241 = tpu.matmul %238, %240, %cst_96 {dimension_numbers = #tpu.dot_dimension_numbers<[1], [0], [0], [1], [0, 0, 1, 1], [], []>} : vector<8x128xf32>, vector<128x512xf32>, vector<8x512xf32> -> vector<8x512xf32>
    %242 = arith.addf %239, %241 : vector<8x512xf32>
    %243 = vector.extract_strided_slice %242 {offsets = [0, 0], sizes = [8, 128], strides = [1, 1]} : vector<8x512xf32> to vector<8x128xf32>
    %cst_97 = arith.constant 5.000000e-01 : f32
    %244 = vector.broadcast %cst_97 : f32 to vector<8x128xf32>
    %245 = arith.mulf %244, %243 : vector<8x128xf32>
    %246 = math.tanh %245 : vector<8x128xf32>
    %cst_98 = arith.constant 5.000000e-01 : f32
    %247 = vector.broadcast %cst_98 : f32 to vector<8x128xf32>
    %248 = arith.mulf %247, %246 : vector<8x128xf32>
    %cst_99 = arith.constant 5.000000e-01 : f32
    %249 = vector.broadcast %cst_99 : f32 to vector<8x128xf32>
    %250 = arith.addf %248, %249 : vector<8x128xf32>
    %251 = vector.extract_strided_slice %242 {offsets = [0, 128], sizes = [8, 128], strides = [1, 1]} : vector<8x512xf32> to vector<8x128xf32>
    %cst_100 = arith.constant 5.000000e-01 : f32
    %252 = vector.broadcast %cst_100 : f32 to vector<8x128xf32>
    %253 = arith.mulf %252, %251 : vector<8x128xf32>
    %254 = math.tanh %253 : vector<8x128xf32>
    %cst_101 = arith.constant 5.000000e-01 : f32
    %255 = vector.broadcast %cst_101 : f32 to vector<8x128xf32>
    %256 = arith.mulf %255, %254 : vector<8x128xf32>
    %cst_102 = arith.constant 5.000000e-01 : f32
    %257 = vector.broadcast %cst_102 : f32 to vector<8x128xf32>
    %258 = arith.addf %256, %257 : vector<8x128xf32>
    %259 = vector.extract_strided_slice %242 {offsets = [0, 256], sizes = [8, 128], strides = [1, 1]} : vector<8x512xf32> to vector<8x128xf32>
    %260 = math.tanh %259 : vector<8x128xf32>
    %261 = vector.extract_strided_slice %242 {offsets = [0, 384], sizes = [8, 128], strides = [1, 1]} : vector<8x512xf32> to vector<8x128xf32>
    %cst_103 = arith.constant 5.000000e-01 : f32
    %262 = vector.broadcast %cst_103 : f32 to vector<8x128xf32>
    %263 = arith.mulf %262, %261 : vector<8x128xf32>
    %264 = math.tanh %263 : vector<8x128xf32>
    %cst_104 = arith.constant 5.000000e-01 : f32
    %265 = vector.broadcast %cst_104 : f32 to vector<8x128xf32>
    %266 = arith.mulf %265, %264 : vector<8x128xf32>
    %cst_105 = arith.constant 5.000000e-01 : f32
    %267 = vector.broadcast %cst_105 : f32 to vector<8x128xf32>
    %268 = arith.addf %266, %267 : vector<8x128xf32>
    %269 = arith.mulf %258, %236 : vector<8x128xf32>
    %270 = arith.mulf %250, %260 : vector<8x128xf32>
    %271 = arith.addf %269, %270 : vector<8x128xf32>
    %272 = math.tanh %271 : vector<8x128xf32>
    %273 = arith.mulf %268, %272 : vector<8x128xf32>
    %c0_106 = arith.constant 0 : index
    %c0_107 = arith.constant 0 : index
    %274 = vector.load %arg4[%c0_106, %c0_107] : memref<128x128xf32, #tpu.memory_space<vmem>>, vector<128x128xf32>
    %cst_108 = arith.constant dense<0.000000e+00> : vector<8x128xf32>
    %275 = tpu.matmul %273, %274, %cst_108 {dimension_numbers = #tpu.dot_dimension_numbers<[1], [0], [0], [1], [0, 0, 1, 1], [], []>} : vector<8x128xf32>, vector<128x128xf32>, vector<8x128xf32> -> vector<8x128xf32>
    %c0_109 = arith.constant 0 : index
    %c0_110 = arith.constant 0 : index
    %276 = vector.load %arg5[%c0_109, %c0_110] : memref<1x128xf32, #tpu.memory_space<vmem>>, vector<1x128xf32>
    %277 = vector.broadcast %276 : vector<1x128xf32> to vector<8x128xf32>
    %278 = arith.addf %275, %277 : vector<8x128xf32>
    %c0_111 = arith.constant 0 : index
    %c0_112 = arith.constant 0 : index
    %279 = vector.load %arg6[%c0_111, %c0_112] : memref<8x128xf32, #tpu.memory_space<vmem>>, vector<8x128xf32>
    tpu.vector_store %arg6[%c0_111, %c0_112], %278 {strides = array<i32>} : memref<8x128xf32, #tpu.memory_space<vmem>>, vector<8x128xf32>,
    return
  }
}

</mosaic_0001>

<bundles_post_ra>
// kernel: lstm_model_forward.1
= control target key start
LH: loop header
LB: loop body
LE: loop exit
PB: predicated region body
PF: predicated region fallthrough
CT: control target
= control target key end

     0   :  { %11 = vsyncpa [#allocation4], 0  ;;  %s3022_s0 = inlined_call_operand.vmem [shape: f32[64,24], index: 0, kind: input, shape index: {}]   ;;  %s3023_s1 = inlined_call_operand.vmem [shape: f32[24,512], index: 1, kind: input, shape index: {}]   ;;  %s3024_s2 = inlined_call_operand.hbm [shape: f32[128,512], index: 2, kind: input, shape index: {}]   ;;  %s3025_s3 = inlined_call_operand.vmem [shape: f32[1,512], index: 3, kind: input, shape index: {}]   ;;  %s3026_s4 = inlined_call_operand.hbm [shape: f32[128,128], index: 4, kind: input, shape index: {}]   ;;  %s3027_s5 = inlined_call_operand.vmem [shape: f32[1,128], index: 5, kind: input, shape index: {}]   ;;  %s3028_s6 = inlined_call_operand.vmem [shape: f32[8,128], index: 6, kind: output, shape index: {}]  }
   0x1   :  { %12 = vsyncpa [#allocation6], 0  ;;  %s2471_s21 = smov [#allocation3]   ;;  %s2423_s25 = scalar_lea.hbm %s3024_s2, 8192 }
   0x2   :  { %s22_s22 = sshll.u32 %s2471_s21, 4  ;;  %p2424_p0 = scmp.ne.s32.totalorder %s3024_s2, %s2423_s25  ;;  %s23_s22 = int_to_ptr.vmem [resolvable:$true] %s22_s22 }
   0x3   :  { %p2427_p1 = scmp.lt.u32.totalorder %s2423_s25, %s3024_s2 }
   0x5   :  { %p2429_p2 = pnand %p2427_p1, %p2424_p0 }
   0x7   :  { %2432 = shalt.err (!%p2429_p2)
}
   0x8   :  { %s2433_s30 = scalar_lea.vmem %s23_s22, 8192  ;;  %p2438_p4 = scmp.lt.s32.totalorder %s23_s22, %s23_s22 }
   0x9   :  { %p2434_p3 = scmp.ne.s32.totalorder %s23_s22, %s2433_s30  ;;  %p2439_p5 = scmp.lt.s32.totalorder %s2433_s30, %s2433_s30 }
   0xb   :  { %p2440_p6 = por %p2439_p5, %p2438_p4 }
   0xd   :  { %p2441_p7 = pnand %p2440_p6, %p2434_p3 }
   0xf   :  { %2444 = shalt.err (!%p2441_p7)
}
  0x10   :  { %s2472_s7 = smov 512   ;;  %s2473_s8 = smov 32  }
  0x11   :  { %28 = dma.hbm_to_vmem [thread:$0]  %s3024_s2, 8192, %s23_s22, [#allocation4], %s2472_s7, %s2472_s7, %s2473_s8  }
  0x12   :  { %s2474_s11 = smov [#allocation5]   ;;  %s2445_s15 = scalar_lea.hbm %s3026_s4, 2048 }
  0x13   :  { %s36_s12 = sshll.u32 %s2474_s11, 4  ;;  %p2446_p8 = scmp.ne.s32.totalorder %s3026_s4, %s2445_s15  ;;  %s37_s12 = int_to_ptr.vmem [resolvable:$true] %s36_s12 }
  0x14   :  { %p2449_p9 = scmp.lt.u32.totalorder %s2445_s15, %s3026_s4 }
  0x16   :  { %p2451_p10 = pnand %p2449_p9, %p2446_p8 }
  0x18   :  { %2454 = shalt.err (!%p2451_p10)
}
  0x19   :  { %s2455_s20 = scalar_lea.vmem %s37_s12, 2048  ;;  %p2460_p12 = scmp.lt.s32.totalorder %s37_s12, %s37_s12 }
  0x1a   :  { %p2456_p11 = scmp.ne.s32.totalorder %s37_s12, %s2455_s20  ;;  %p2461_p13 = scmp.lt.s32.totalorder %s2455_s20, %s2455_s20 }
  0x1c   :  { %p2462_p0 = por %p2461_p13, %p2460_p12 }
  0x1e   :  { %p2463_p1 = pnand %p2462_p0, %p2456_p11 }
  0x20   :  { %2466 = shalt.err (!%p2463_p1)
}
  0x21   :  { %s2475_s2 = smov 128   ;;  %s2476_s21 = smov 8  }
  0x22   :  { %42 = dma.hbm_to_vmem [thread:$0]  %s3026_s4, 2048, %s37_s12, [#allocation6], %s2475_s2, %s2475_s2, %s2476_s21  }
  0x23   :  { %2467 = dma.done.wait [#allocation4], 8192  }
  0x24   :  { %2468 = vsyncadd [#allocation4], 4294959104 }
  0x25   :  { %2469 = dma.done.wait [#allocation6], 2048  }
  0x26   :  { %2470 = vsyncadd [#allocation6], 4294965248  ;;  %v2477_v0 = vmov 0.0   ;;  %v60_v1 = vld [vmem:[%s3023_s1 + $0x8] sm:$0xff]  ;;  %v59_v3 = vld [vmem:[%s3023_s1] sm:$0xff]  ;;  %vm93_vm0 = vcmask 195584  }
  0x27   :  { %182 = vmatprep.mubr.f32.mxu0 %v2477_v0  ;;  %295 = vmatprep.mubr.f32.mxu1 %v2477_v0  ;;  %v64_v2 = vld [vmem:[%s3023_s1 + $0x28] sm:$0xff]  ;;  %v63_v5 = vld [vmem:[%s3023_s1 + $0x20] sm:$0xff]  ;;  %v62_v8 = vld [vmem:[%s3023_s1 + $0x18] sm:$0xff]  ;;  %vm2479_vm1 = vmmov 0  }
  0x28   :  { %v1800_v4 = vpack.c.bf16 %v64_v2, %v60_v1  ;;  %v1802_v6 = vpack.c.bf16 %v63_v5, %v59_v3  ;;  %v68_v7 = vld [vmem:[%s3023_s1 + $0x48] sm:$0xff]  ;;  %v66_v9 = vld [vmem:[%s3023_s1 + $0x38] sm:$0xff]  ;;  %v61_v11 = vld [vmem:[%s3023_s1 + $0x10] sm:$0xff] }
  0x29   :  { %v1804_v10 = vpack.c.bf16 %v66_v9, %v62_v8  ;;  %v65_v12 = vld [vmem:[%s3023_s1 + $0x30] sm:$0xff]  ;;  %v70_v14 = vld [vmem:[%s3023_s1 + $0x58] sm:$0xff]  ;;  %v67_v15 = vld [vmem:[%s3023_s1 + $0x40] sm:$0xff] }
  0x2a   :  { %1801 = vmatprep.subr.bf16.mxu0 %v1800_v4  ;;  %v1806_v13 = vpack.c.bf16 %v65_v12, %v61_v11  ;;  %v51_v16 = vld [vmem:[%s3022_s0] sm:$0xff]  ;;  %v69_v17 = vld [vmem:[%s3023_s1 + $0x50] sm:$0xff]  ;;  %v396_v18 = vld [vmem:[#allocation3 + $0x8] sm:$0xff] }
  0x2b   :  { %1803 = vmatpush1.bf16.msra.mxu0 %v1802_v6  ;;  %1805 = vmatprep.subr.bf16.mxu1 %v1804_v10  ;;  %v400_v19 = vld [vmem:[#allocation3 + $0x28] sm:$0xff]  ;;  %v398_v20 = vld [vmem:[#allocation3 + $0x18] sm:$0xff]  ;;  %v395_v22 = vld [vmem:[#allocation3] sm:$0xff] }
  0x2c   :  { %122 = vmatprep.subr.mxu0 %v68_v7  ;;  %1807 = vmatpush1.bf16.msra.mxu1 %v1806_v13  ;;  %v2584_v21 = vpack.c.bf16 %v400_v19, %v396_v18  ;;  %v399_v23 = vld [vmem:[#allocation3 + $0x20] sm:$0xff]  ;;  %v402_v24 = vld [vmem:[#allocation3 + $0x38] sm:$0xff]  ;;  %v397_v27 = vld [vmem:[#allocation3 + $0x10] sm:$0xff] }
  0x2d   :  { %235 = vmatprep.subr.mxu1 %v70_v14  ;;  %v2586_v25 = vpack.c.bf16 %v399_v23, %v395_v22  ;;  %v2588_v26 = vpack.c.bf16 %v402_v24, %v398_v20  ;;  %v401_v28 = vld [vmem:[#allocation3 + $0x30] sm:$0xff]  ;;  %v404_v30 = vld [vmem:[#allocation3 + $0x48] sm:$0xff]  ;;  %v406_v32 = vld [vmem:[#allocation3 + $0x58] sm:$0xff] }
  0x2e   :  { %v2591_v29 = vpack.c.bf16 %v401_v28, %v397_v27  ;;  %v408_v31 = vld [vmem:[#allocation3 + $0x68] sm:$0xff]  ;;  %v403_v34 = vld [vmem:[#allocation3 + $0x40] sm:$0xff]  ;;  %v410_v36 = vld [vmem:[#allocation3 + $0x78] sm:$0xff] }
  0x2f   :  { %123 = vmatpush1.msra.mxu0 %v67_v15  ;;  %v2596_v33 = vpack.c.bf16 %v408_v31, %v404_v30  ;;  %v407_v35 = vld [vmem:[#allocation3 + $0x60] sm:$0xff]  ;;  %v52_v37 = vld [vmem:[%s3022_s0 + $0x8] sm:$0xff]  ;;  %v2603_v39 = vpack.c.bf16 %v410_v36, %v406_v32  ;;  %v405_v40 = vld [vmem:[#allocation3 + $0x50] sm:$0xff] }
  0x30   :  { %1731 = vmatmul.mubr.msk.f32.vlgmr.msra.gmra.mrb[0].mxu0 %vm93_vm0, %v51_v16  ;;  %236 = vmatpush1.msra.mxu1 %v69_v17  ;;  %v2601_v38 = vpack.c.bf16 %v407_v35, %v403_v34  ;;  %v409_v41 = vld [vmem:[#allocation3 + $0x70] sm:$0xff]  ;;  %v412_v43 = vld [vmem:[#allocation3 + $0x88] sm:$0xff]  ;;  %v414_v45 = vld [vmem:[#allocation3 + $0x98] sm:$0xff] }
  0x31   :  { %188 = vmatprep.mubr.f32.mxu0 %v2477_v0  ;;  %1739 = vmatmul.mubr.msk.f32.vlgmr.msra.gmra.mrb[0].mxu1 %vm93_vm0, %v51_v16  ;;  %v2607_v42 = vpack.c.bf16 %v409_v41, %v405_v40  ;;  %v416_v44 = vld [vmem:[#allocation3 + $0xa8] sm:$0xff]  ;;  %v411_v47 = vld [vmem:[#allocation3 + $0x80] sm:$0xff]  ;;  %v418_v49 = vld [vmem:[#allocation3 + $0xb8] sm:$0xff] }
  0x32   :  { %301 = vmatprep.mubr.f32.mxu1 %v2477_v0  ;;  %1809 = vmatprep.subr.bf16.mxu0 %v2584_v21  ;;  %v2613_v46 = vpack.c.bf16 %v416_v44, %v412_v43  ;;  %v415_v48 = vld [vmem:[#allocation3 + $0xa0] sm:$0xff]  ;;  %v53_v50 = vld [vmem:[%s3022_s0 + $0x10] sm:$0xff]  ;;  %v2622_v52 = vpack.c.bf16 %v418_v49, %v414_v45  ;;  %v420_v56 = vld [vmem:[#allocation3 + $0xc8] sm:$0xff] }
  0x33   :  { %1811 = vmatpush1.bf16.msra.mxu0 %v2586_v25  ;;  %1841 = vmatprep.subr.bf16.mxu1 %v2588_v26  ;;  %v2620_v51 = vpack.c.bf16 %v415_v48, %v411_v47  ;;  %v413_v53 = vld [vmem:[#allocation3 + $0x90] sm:$0xff]  ;;  %v424_v57 = vld [vmem:[#allocation3 + $0xe8] sm:$0xff]  ;;  %v422_v58 = vld [vmem:[#allocation3 + $0xd8] sm:$0xff] }
  0x34   :  { %1843 = vmatpush1.bf16.msra.mxu1 %v2591_v29  ;;  %1813 = vmatprep.subr.bf16.mxu0 %v2596_v33  ;;  %v417_v54 = vld [vmem:[#allocation3 + $0xb0] sm:$0xff]  ;;  %v2632_v59 = vpack.c.bf16 %v424_v57, %v420_v56  ;;  %v419_v60 = vld [vmem:[#allocation3 + $0xc0] sm:$0xff]  ;;  %v426_v62 = vld [vmem:[#allocation3 + $0xf8] sm:$0xff] }
  0x35   :  { %1732 = vmatmul.mubr.msk.f32.gmra.mrb[2].mxu0 %vm93_vm0, %v52_v37  ;;  %1740 = vmatmul.mubr.msk.f32.gmra.mrb[2].mxu1 %vm93_vm0, %v52_v37  ;;  %v2626_v55 = vpack.c.bf16 %v417_v54, %v413_v53  ;;  %v423_v61 = vld [vmem:[#allocation3 + $0xe0] sm:$0xff]  ;;  %v54_v63 = vld [vmem:[%s3022_s0 + $0x18] sm:$0xff]  ;;  %v2641_v2 = vpack.c.bf16 %v426_v62, %v422_v58  ;;  %v421_v3 = vld [vmem:[#allocation3 + $0xd0] sm:$0xff] }
  0x36   :  { %1845 = vmatprep.subr.bf16.mxu1 %v2603_v39  ;;  %194 = vmatprep.mubr.f32.mxu0 %v2477_v0  ;;  %v2639_v1 = vpack.c.bf16 %v423_v61, %v419_v60  ;;  %v425_v4 = vld [vmem:[#allocation3 + $0xf0] sm:$0xff]  ;;  %v428_v6 = vld [vmem:[#allocation3 + $0x108] sm:$0xff]  ;;  %v430_v8 = vld [vmem:[#allocation3 + $0x118] sm:$0xff] }
  0x37   :  { %1815 = vmatpush1.bf16.msra.mxu0 %v2601_v38  ;;  %307 = vmatprep.mubr.f32.mxu1 %v2477_v0  ;;  %v2645_v5 = vpack.c.bf16 %v425_v4, %v421_v3  ;;  %v432_v7 = vld [vmem:[#allocation3 + $0x128] sm:$0xff]  ;;  %v427_v10 = vld [vmem:[#allocation3 + $0x100] sm:$0xff]  ;;  %v434_v12 = vld [vmem:[#allocation3 + $0x138] sm:$0xff] }
  0x38   :  { %1847 = vmatpush1.bf16.msra.mxu1 %v2607_v42  ;;  %1817 = vmatprep.subr.bf16.mxu0 %v2613_v46  ;;  %v2651_v9 = vpack.c.bf16 %v432_v7, %v428_v6  ;;  %v431_v11 = vld [vmem:[#allocation3 + $0x120] sm:$0xff]  ;;  %v2660_v15 = vpack.c.bf16 %v434_v12, %v430_v8  ;;  %v429_v16 = vld [vmem:[#allocation3 + $0x110] sm:$0xff]  ;;  %v436_v19 = vld [vmem:[#allocation3 + $0x148] sm:$0xff]  ;;  %v73_v12 = vlaneseq }
  0x39   :  { %1733 = vmatmul.mubr.msk.f32.gmra.mrb[4].mxu0 %vm93_vm0, %v53_v50  ;;  %1741 = vmatmul.mubr.msk.f32.gmra.mrb[4].mxu1 %vm93_vm0, %v53_v50  ;;  %v55_v13 = vld [vmem:[%s3022_s0 + $0x20] sm:$0xff]  ;;  %v2658_v14 = vpack.c.bf16 %v431_v11, %v427_v10  ;;  %v433_v17 = vld [vmem:[#allocation3 + $0x130] sm:$0xff]  ;;  %v440_v20 = vld [vmem:[#allocation3 + $0x168] sm:$0xff] }
  0x3a   :  { %1849 = vmatprep.subr.bf16.mxu1 %v2622_v52  ;;  %200 = vmatprep.mubr.f32.mxu0 %v2477_v0  ;;  %v2664_v18 = vpack.c.bf16 %v433_v17, %v429_v16  ;;  %v438_v22 = vld [vmem:[#allocation3 + $0x158] sm:$0xff]  ;;  %v2670_v23 = vpack.c.bf16 %v440_v20, %v436_v19  ;;  %v435_v24 = vld [vmem:[#allocation3 + $0x140] sm:$0xff]  ;;  %v56_v30 = vld [vmem:[%s3022_s0 + $0x28] sm:$0xff] }
  0x3b   :  { %1819 = vmatpush1.bf16.msra.mxu0 %v2620_v51  ;;  %313 = vmatprep.mubr.f32.mxu1 %v2477_v0  ;;  %v439_v27 = vld [vmem:[#allocation3 + $0x160] sm:$0xff]  ;;  %v442_v28 = vld [vmem:[#allocation3 + $0x178] sm:$0xff]  ;;  %v437_v34 = vld [vmem:[#allocation3 + $0x150] sm:$0xff] }
  0x3c   :  { %1851 = vmatpush1.bf16.msra.mxu1 %v2626_v55  ;;  %1821 = vmatprep.subr.bf16.mxu0 %v2632_v59  ;;  %v2677_v31 = vpack.c.bf16 %v439_v27, %v435_v24  ;;  %v2679_v32 = vpack.c.bf16 %v442_v28, %v438_v22  ;;  %v441_v35 = vld [vmem:[#allocation3 + $0x170] sm:$0xff]  ;;  %v444_v37 = vld [vmem:[#allocation3 + $0x188] sm:$0xff]  ;;  %v446_v41 = vld [vmem:[#allocation3 + $0x198] sm:$0xff] }
  0x3d   :  { %1734 = vmatmul.mubr.msk.f32.gmra.mrb[6].mxu0 %vm93_vm0, %v54_v63  ;;  %1742 = vmatmul.mubr.msk.f32.gmra.mrb[6].mxu1 %vm93_vm0, %v54_v63  ;;  %v2683_v36 = vpack.c.bf16 %v441_v35, %v437_v34  ;;  %v448_v40 = vld [vmem:[#allocation3 + $0x1a8] sm:$0xff]  ;;  %v443_v44 = vld [vmem:[#allocation3 + $0x180] sm:$0xff]  ;;  %v450_v47 = vld [vmem:[#allocation3 + $0x1b8] sm:$0xff] }
  0x3e   :  { %1853 = vmatprep.subr.bf16.mxu1 %v2641_v2  ;;  %206 = vmatprep.mubr.f32.mxu0 %v2477_v0  ;;  %v2689_v43 = vpack.c.bf16 %v448_v40, %v444_v37  ;;  %v447_v45 = vld [vmem:[#allocation3 + $0x1a0] sm:$0xff]  ;;  %v57_v48 = vld [vmem:[%s3022_s0 + $0x30] sm:$0xff]  ;;  %v2698_v50 = vpack.c.bf16 %v450_v47, %v446_v41  ;;  %v452_v57 = vld [vmem:[#allocation3 + $0x1c8] sm:$0xff] }
  0x3f   :  { %1823 = vmatpush1.bf16.msra.mxu0 %v2639_v1  ;;  %319 = vmatprep.mubr.f32.mxu1 %v2477_v0  ;;  %v2696_v49 = vpack.c.bf16 %v447_v45, %v443_v44  ;;  %v445_v53 = vld [vmem:[#allocation3 + $0x190] sm:$0xff]  ;;  %v456_v58 = vld [vmem:[#allocation3 + $0x1e8] sm:$0xff]  ;;  %v454_v60 = vld [vmem:[#allocation3 + $0x1d8] sm:$0xff] }
  0x40   :  { %1855 = vmatpush1.bf16.msra.mxu1 %v2645_v5  ;;  %1825 = vmatprep.subr.bf16.mxu0 %v2651_v9  ;;  %v449_v54 = vld [vmem:[#allocation3 + $0x1b0] sm:$0xff]  ;;  %v2708_v61 = vpack.c.bf16 %v456_v58, %v452_v57  ;;  %v451_v62 = vld [vmem:[#allocation3 + $0x1c0] sm:$0xff]  ;;  %v458_v3 = vld [vmem:[#allocation3 + $0x1f8] sm:$0xff] }
  0x41   :  { %1735 = vmatmul.mubr.msk.f32.gmra.mrb[8].mxu0 %vm93_vm0, %v55_v13  ;;  %1743 = vmatmul.mubr.msk.f32.gmra.mrb[8].mxu1 %vm93_vm0, %v55_v13  ;;  %v2702_v56 = vpack.c.bf16 %v449_v54, %v445_v53  ;;  %v455_v63 = vld [vmem:[#allocation3 + $0x1e0] sm:$0xff]  ;;  %v58_v4 = vld [vmem:[%s3022_s0 + $0x38] sm:$0xff]  ;;  %v2717_v7 = vpack.c.bf16 %v458_v3, %v454_v60  ;;  %v453_v8 = vld [vmem:[#allocation3 + $0x1d0] sm:$0xff]  ;;  %v2731_v13 = vshrl.u32 %v73_v12, 7 }
  0x42   :  { %1857 = vmatprep.subr.bf16.mxu1 %v2660_v15  ;;  %212 = vmatprep.mubr.f32.mxu0 %v2477_v0  ;;  %v2715_v6 = vpack.c.bf16 %v455_v63, %v451_v62  ;;  %v457_v10 = vld [vmem:[#allocation3 + $0x1f0] sm:$0xff]  ;;  %v2737_v17 = vld [vmem:[%s3025_s3] sm:$0xf] }
  0x43   :  { %1827 = vmatpush1.bf16.msra.mxu0 %v2658_v14  ;;  %325 = vmatprep.mubr.f32.mxu1 %v2477_v0  ;;  %v2721_v11 = vpack.c.bf16 %v457_v10, %v453_v8  ;;  %v75_v16 = vsub.s32 0, %v2731_v13  ;;  %v83_v19 = vsub.s32 2, %v2731_v13  ;;  %v87_v22 = vsub.s32 3, %v2731_v13 }
  0x44   :  { %1859 = vmatpush1.bf16.msra.mxu1 %v2664_v18  ;;  %1829 = vmatprep.subr.bf16.mxu0 %v2670_v23 }
  0x45   :  { %1736 = vmatmul.mubr.msk.f32.gmra.mrb[10].mxu0 %vm93_vm0, %v56_v30  ;;  %1744 = vmatmul.mubr.msk.f32.gmra.mrb[10].mxu1 %vm93_vm0, %v56_v30  ;;  %v2741_v20 = vrot.slane %v2737_v17, %v75_v16  ;;  %v2745_v24 = vrot.slane %v2737_v17, %v83_v19  ;;  %v2749_v35 = vrot.slane %v2737_v17, %v87_v22 }
  0x46   :  { %1861 = vmatprep.subr.bf16.mxu1 %v2679_v32  ;;  %218 = vmatprep.mubr.f32.mxu0 %v2477_v0 }
  0x47   :  { %1831 = vmatpush1.bf16.msra.mxu0 %v2677_v31  ;;  %331 = vmatprep.mubr.f32.mxu1 %v2477_v0 }
  0x48   :  { %1863 = vmatpush1.bf16.msra.mxu1 %v2683_v36  ;;  %1833 = vmatprep.subr.bf16.mxu0 %v2689_v43 }
  0x49   :  { %1737 = vmatmul.mubr.msk.f32.gmra.mrb[12].mxu0 %vm93_vm0, %v57_v48  ;;  %1745 = vmatmul.mubr.msk.f32.gmra.mrb[12].mxu1 %vm93_vm0, %v57_v48 }
  0x4a   :  { %1865 = vmatprep.subr.bf16.mxu1 %v2698_v50  ;;  %224 = vmatprep.mubr.f32.mxu0 %v2477_v0 }
  0x4b   :  { %1835 = vmatpush1.bf16.msra.mxu0 %v2696_v49  ;;  %337 = vmatprep.mubr.f32.mxu1 %v2477_v0 }
  0x4c   :  { %1867 = vmatpush1.bf16.msra.mxu1 %v2702_v56  ;;  %1837 = vmatprep.subr.bf16.mxu0 %v2708_v61 }
  0x4d   :  { %1738 = vmatmul.mubr.msk.f32.gmra.mrb[14].mxu0 %vm93_vm0, %v58_v4  ;;  %1746 = vmatmul.mubr.msk.f32.gmra.mrb[14].mxu1 %vm93_vm0, %v58_v4  ;;  %v79_v4 = vsub.s32 1, %v2731_v13 }
  0x4e   :  { %1869 = vmatprep.subr.bf16.mxu1 %v2717_v7  ;;  %523 = vmatprep.mubr.f32.mxu0 %v2477_v0 }
  0x4f   :  { %1839 = vmatpush1.bf16.msra.mxu0 %v2715_v6  ;;  %594 = vmatprep.mubr.f32.mxu1 %v2477_v0  ;;  %v2792_v8 = vrot.slane %v2737_v17, %v79_v4 }
  0x50   :  { %1871 = vmatpush1.bf16.msra.mxu1 %v2721_v11  ;;  %1873 = vmatprep.subr.bf16.mxu0 %v2584_v21 }
  0x51   :  { %1905 = vmatprep.subr.bf16.mxu1 %v2588_v26 }
 0x103   :  { %v184_v27 = vpop.f32.mrb[0].mxu0 }
 0x104   :  { %v185_v28 = vadd.f32 %v184_v27, %v2741_v20  ;;  %v186_v30 = vpop.f32.mrb[1].mxu0  ;;  %v297_v34 = vpop.f32.mrb[0].mxu1 }
 0x105   :  { %v298_v40 = vadd.f32 %v297_v34, %v2745_v24  ;;  %v299_v41 = vpop.f32.mrb[1].mxu1 }
 0x106   :  { %v379_v37 = vmul.f32 0.5, %v185_v28  ;;  %v300_v44 = vadd.f32 %v299_v41, %v2749_v35 }
 0x108   :  { %2345 = vtanh.f32 %v379_v37  ;;  %v384_v45 = vmul.f32 0.5, %v300_v44 }
 0x109   :  { %2347 = vtanh.f32 %v298_v40 }
 0x10a   :  { %2349 = vtanh.f32 %v384_v45 }
 0x112   :  { %v2346_v47 = vpop.eup %2345 }
 0x113   :  { %v381_v48 = vmul.f32 0.5, %v2346_v47  ;;  %v2348_v53 = vpop.eup %2347 }
 0x114   :  { %v2350_v58 = vpop.eup %2349 }
 0x115   :  { %v382_v54 = vadd.f32 0.5, %v381_v48  ;;  %v386_v60 = vmul.f32 0.5, %v2350_v58 }
 0x117   :  { %v2753_v57 = vmul.f32 %v2348_v53, %v382_v54  ;;  %v387_v62 = vadd.f32 0.5, %v386_v60 }
 0x119   :  { %2351 = vtanh.f32 %v2753_v57 }
 0x123   :  { %v2352_v63 = vpop.eup %2351 }
 0x124   :  { %v390_v3 = vmul.f32 %v2352_v63, %v387_v62 }
 0x126   :  { %524 = vmatmul.mubr.f32.vlgmr.msra.gmra.mrb[2].mxu0 %v390_v3  ;;  %595 = vmatmul.mubr.f32.vlgmr.msra.gmra.mrb[2].mxu1 %v390_v3 }
 0x127   :  { %1875 = vmatpush1.bf16.msra.mxu0 %v2586_v25  ;;  %1907 = vmatpush1.bf16.msra.mxu1 %v2591_v29 }
 0x128   :  { %1877 = vmatprep.subr.bf16.mxu0 %v2596_v33  ;;  %1909 = vmatprep.subr.bf16.mxu1 %v2603_v39 }
 0x129   :  { %691 = vmatprep.mubr.f32.mxu0 %v2477_v0  ;;  %762 = vmatprep.mubr.f32.mxu1 %v2477_v0 }
 0x12b   :  { %1879 = vmatpush1.bf16.msra.mxu0 %v2601_v38  ;;  %1911 = vmatpush1.bf16.msra.mxu1 %v2607_v42 }
 0x12c   :  { %1881 = vmatprep.subr.bf16.mxu0 %v2613_v46  ;;  %1913 = vmatprep.subr.bf16.mxu1 %v2622_v52 }
 0x12f   :  { %1883 = vmatpush1.bf16.msra.mxu0 %v2620_v51  ;;  %1915 = vmatpush1.bf16.msra.mxu1 %v2626_v55 }
 0x130   :  { %1885 = vmatprep.subr.bf16.mxu0 %v2632_v59  ;;  %1917 = vmatprep.subr.bf16.mxu1 %v2641_v2 }
 0x133   :  { %1887 = vmatpush1.bf16.msra.mxu0 %v2639_v1  ;;  %1919 = vmatpush1.bf16.msra.mxu1 %v2645_v5 }
 0x134   :  { %1889 = vmatprep.subr.bf16.mxu0 %v2651_v9  ;;  %1921 = vmatprep.subr.bf16.mxu1 %v2660_v15 }
 0x137   :  { %1891 = vmatpush1.bf16.msra.mxu0 %v2658_v14  ;;  %1923 = vmatpush1.bf16.msra.mxu1 %v2664_v18 }
 0x138   :  { %1893 = vmatprep.subr.bf16.mxu0 %v2670_v23  ;;  %1925 = vmatprep.subr.bf16.mxu1 %v2679_v32 }
 0x13b   :  { %1895 = vmatpush1.bf16.msra.mxu0 %v2677_v31  ;;  %1927 = vmatpush1.bf16.msra.mxu1 %v2683_v36 }
 0x13c   :  { %1897 = vmatprep.subr.bf16.mxu0 %v2689_v43  ;;  %1929 = vmatprep.subr.bf16.mxu1 %v2698_v50 }
 0x13f   :  { %1899 = vmatpush1.bf16.msra.mxu0 %v2696_v49  ;;  %1931 = vmatpush1.bf16.msra.mxu1 %v2702_v56 }
 0x140   :  { %1901 = vmatprep.subr.bf16.mxu0 %v2708_v61  ;;  %1933 = vmatprep.subr.bf16.mxu1 %v2717_v7 }
 0x143   :  { %1903 = vmatpush1.bf16.msra.mxu0 %v2715_v6  ;;  %1935 = vmatpush1.bf16.msra.mxu1 %v2721_v11 }
 0x144   :  { %1937 = vmatprep.subr.bf16.mxu0 %v2584_v21  ;;  %1969 = vmatprep.subr.bf16.mxu1 %v2588_v26 }
 0x1f9   :  { %v525_v10 = vpop.f32.mrb[2].mxu0  ;;  %v596_v12 = vpop.f32.mrb[2].mxu1 }
 0x1fa   :  { %v2280_v16 = vadd.f32 %v525_v10, %v2741_v20  ;;  %v527_v19 = vpop.f32.mrb[3].mxu0  ;;  %v598_v22 = vpop.f32.mrb[3].mxu1  ;;  %v2294_v34 = vadd.f32 %v596_v12, %v2745_v24 }
 0x1fb   :  { %v2281_v27 = vadd.f32 %v527_v19, %v2792_v8  ;;  %v2295_v13 = vadd.f32 %v598_v22, %v2749_v35 }
 0x1fc   :  { %v605_v28 = vmul.f32 0.5, %v2280_v16 }
 0x1fd   :  { %v609_v30 = vmul.f32 0.5, %v2281_v27  ;;  %v614_v37 = vmul.f32 0.5, %v2295_v13 }
 0x1fe   :  { %2353 = vtanh.f32 %v605_v28 }
 0x1ff   :  { %2355 = vtanh.f32 %v609_v30 }
 0x200   :  { %2357 = vtanh.f32 %v2294_v34 }
 0x201   :  { %2359 = vtanh.f32 %v614_v37 }
 0x208   :  { %v2354_v17 = vpop.eup %2353 }
 0x209   :  { %v2356_v40 = vpop.eup %2355  ;;  %v607_v41 = vmul.f32 0.5, %v2354_v17 }
 0x20a   :  { %v611_v44 = vmul.f32 0.5, %v2356_v40  ;;  %v2358_v47 = vpop.eup %2357 }
 0x20b   :  { %v608_v45 = vadd.f32 0.5, %v607_v41  ;;  %v2360_v60 = vpop.eup %2359 }
 0x20c   :  { %v612_v48 = vadd.f32 0.5, %v611_v44  ;;  %v616_v62 = vmul.f32 0.5, %v2360_v60 }
 0x20d   :  { %v619_v53 = vmul.f32 %v2358_v47, %v608_v45 }
 0x20e   :  { %v618_v54 = vmul.f32 %v612_v48, %v2753_v57  ;;  %v617_v63 = vadd.f32 0.5, %v616_v62 }
 0x210   :  { %v2799_v58 = vadd.f32 %v619_v53, %v618_v54 }
 0x212   :  { %2361 = vtanh.f32 %v2799_v58 }
 0x21c   :  { %v2362_v3 = vpop.eup %2361 }
 0x21d   :  { %v622_v4 = vmul.f32 %v2362_v3, %v617_v63 }
 0x21f   :  { %692 = vmatmul.mubr.f32.vlgmr.msra.gmra.mrb[4].mxu0 %v622_v4  ;;  %763 = vmatmul.mubr.f32.vlgmr.msra.gmra.mrb[4].mxu1 %v622_v4 }
 0x220   :  { %1939 = vmatpush1.bf16.msra.mxu0 %v2586_v25  ;;  %1971 = vmatpush1.bf16.msra.mxu1 %v2591_v29 }
 0x221   :  { %1941 = vmatprep.subr.bf16.mxu0 %v2596_v33  ;;  %1973 = vmatprep.subr.bf16.mxu1 %v2603_v39 }
 0x222   :  { %859 = vmatprep.mubr.f32.mxu0 %v2477_v0  ;;  %930 = vmatprep.mubr.f32.mxu1 %v2477_v0 }
 0x224   :  { %1943 = vmatpush1.bf16.msra.mxu0 %v2601_v38  ;;  %1975 = vmatpush1.bf16.msra.mxu1 %v2607_v42 }
 0x225   :  { %1945 = vmatprep.subr.bf16.mxu0 %v2613_v46  ;;  %1977 = vmatprep.subr.bf16.mxu1 %v2622_v52 }
 0x228   :  { %1947 = vmatpush1.bf16.msra.mxu0 %v2620_v51  ;;  %1979 = vmatpush1.bf16.msra.mxu1 %v2626_v55 }
 0x229   :  { %1949 = vmatprep.subr.bf16.mxu0 %v2632_v59  ;;  %1981 = vmatprep.subr.bf16.mxu1 %v2641_v2 }
 0x22c   :  { %1951 = vmatpush1.bf16.msra.mxu0 %v2639_v1  ;;  %1983 = vmatpush1.bf16.msra.mxu1 %v2645_v5 }
 0x22d   :  { %1953 = vmatprep.subr.bf16.mxu0 %v2651_v9  ;;  %1985 = vmatprep.subr.bf16.mxu1 %v2660_v15 }
 0x230   :  { %1955 = vmatpush1.bf16.msra.mxu0 %v2658_v14  ;;  %1987 = vmatpush1.bf16.msra.mxu1 %v2664_v18 }
 0x231   :  { %1957 = vmatprep.subr.bf16.mxu0 %v2670_v23  ;;  %1989 = vmatprep.subr.bf16.mxu1 %v2679_v32 }
 0x234   :  { %1959 = vmatpush1.bf16.msra.mxu0 %v2677_v31  ;;  %1991 = vmatpush1.bf16.msra.mxu1 %v2683_v36 }
 0x235   :  { %1961 = vmatprep.subr.bf16.mxu0 %v2689_v43  ;;  %1993 = vmatprep.subr.bf16.mxu1 %v2698_v50 }
 0x238   :  { %1963 = vmatpush1.bf16.msra.mxu0 %v2696_v49  ;;  %1995 = vmatpush1.bf16.msra.mxu1 %v2702_v56 }
 0x239   :  { %1965 = vmatprep.subr.bf16.mxu0 %v2708_v61  ;;  %1997 = vmatprep.subr.bf16.mxu1 %v2717_v7 }
 0x23c   :  { %1967 = vmatpush1.bf16.msra.mxu0 %v2715_v6  ;;  %1999 = vmatpush1.bf16.msra.mxu1 %v2721_v11 }
 0x23d   :  { %2001 = vmatprep.subr.bf16.mxu0 %v2584_v21  ;;  %2033 = vmatprep.subr.bf16.mxu1 %v2588_v26 }
 0x2f2   :  { %v693_v57 = vpop.f32.mrb[4].mxu0  ;;  %v764_v10 = vpop.f32.mrb[4].mxu1 }
 0x2f3   :  { %v2282_v12 = vadd.f32 %v693_v57, %v2741_v20  ;;  %v695_v16 = vpop.f32.mrb[5].mxu0  ;;  %v766_v19 = vpop.f32.mrb[5].mxu1  ;;  %v2296_v30 = vadd.f32 %v764_v10, %v2745_v24 }
 0x2f4   :  { %v2283_v22 = vadd.f32 %v695_v16, %v2792_v8  ;;  %v2297_v34 = vadd.f32 %v766_v19, %v2749_v35 }
 0x2f5   :  { %v773_v27 = vmul.f32 0.5, %v2282_v12 }
 0x2f6   :  { %v777_v28 = vmul.f32 0.5, %v2283_v22  ;;  %v782_v13 = vmul.f32 0.5, %v2297_v34 }
 0x2f7   :  { %2363 = vtanh.f32 %v773_v27 }
 0x2f8   :  { %2365 = vtanh.f32 %v777_v28 }
 0x2f9   :  { %2367 = vtanh.f32 %v2296_v30 }
 0x2fa   :  { %2369 = vtanh.f32 %v782_v13 }
 0x301   :  { %v2364_v37 = vpop.eup %2363 }
 0x302   :  { %v2366_v17 = vpop.eup %2365  ;;  %v775_v40 = vmul.f32 0.5, %v2364_v37 }
 0x303   :  { %v779_v41 = vmul.f32 0.5, %v2366_v17  ;;  %v2368_v45 = vpop.eup %2367 }
 0x304   :  { %v776_v44 = vadd.f32 0.5, %v775_v40  ;;  %v2370_v60 = vpop.eup %2369 }
 0x305   :  { %v780_v47 = vadd.f32 0.5, %v779_v41  ;;  %v784_v62 = vmul.f32 0.5, %v2370_v60 }
 0x306   :  { %v787_v48 = vmul.f32 %v2368_v45, %v776_v44 }
 0x307   :  { %v786_v53 = vmul.f32 %v780_v47, %v2799_v58  ;;  %v785_v63 = vadd.f32 0.5, %v784_v62 }
 0x309   :  { %v2841_v54 = vadd.f32 %v787_v48, %v786_v53 }
 0x30b   :  { %2371 = vtanh.f32 %v2841_v54 }
 0x315   :  { %v2372_v3 = vpop.eup %2371 }
 0x316   :  { %v790_v4 = vmul.f32 %v2372_v3, %v785_v63 }
 0x318   :  { %860 = vmatmul.mubr.f32.vlgmr.msra.gmra.mrb[6].mxu0 %v790_v4  ;;  %931 = vmatmul.mubr.f32.vlgmr.msra.gmra.mrb[6].mxu1 %v790_v4 }
 0x319   :  { %2003 = vmatpush1.bf16.msra.mxu0 %v2586_v25  ;;  %2035 = vmatpush1.bf16.msra.mxu1 %v2591_v29 }
 0x31a   :  { %2005 = vmatprep.subr.bf16.mxu0 %v2596_v33  ;;  %2037 = vmatprep.subr.bf16.mxu1 %v2603_v39 }
 0x31b   :  { %1027 = vmatprep.mubr.f32.mxu0 %v2477_v0  ;;  %1098 = vmatprep.mubr.f32.mxu1 %v2477_v0 }
 0x31d   :  { %2007 = vmatpush1.bf16.msra.mxu0 %v2601_v38  ;;  %2039 = vmatpush1.bf16.msra.mxu1 %v2607_v42 }
 0x31e   :  { %2009 = vmatprep.subr.bf16.mxu0 %v2613_v46  ;;  %2041 = vmatprep.subr.bf16.mxu1 %v2622_v52 }
 0x321   :  { %2011 = vmatpush1.bf16.msra.mxu0 %v2620_v51  ;;  %2043 = vmatpush1.bf16.msra.mxu1 %v2626_v55 }
 0x322   :  { %2013 = vmatprep.subr.bf16.mxu0 %v2632_v59  ;;  %2045 = vmatprep.subr.bf16.mxu1 %v2641_v2 }
 0x325   :  { %2015 = vmatpush1.bf16.msra.mxu0 %v2639_v1  ;;  %2047 = vmatpush1.bf16.msra.mxu1 %v2645_v5 }
 0x326   :  { %2017 = vmatprep.subr.bf16.mxu0 %v2651_v9  ;;  %2049 = vmatprep.subr.bf16.mxu1 %v2660_v15 }
 0x329   :  { %2019 = vmatpush1.bf16.msra.mxu0 %v2658_v14  ;;  %2051 = vmatpush1.bf16.msra.mxu1 %v2664_v18 }
 0x32a   :  { %2021 = vmatprep.subr.bf16.mxu0 %v2670_v23  ;;  %2053 = vmatprep.subr.bf16.mxu1 %v2679_v32 }
 0x32d   :  { %2023 = vmatpush1.bf16.msra.mxu0 %v2677_v31  ;;  %2055 = vmatpush1.bf16.msra.mxu1 %v2683_v36 }
 0x32e   :  { %2025 = vmatprep.subr.bf16.mxu0 %v2689_v43  ;;  %2057 = vmatprep.subr.bf16.mxu1 %v2698_v50 }
 0x331   :  { %2027 = vmatpush1.bf16.msra.mxu0 %v2696_v49  ;;  %2059 = vmatpush1.bf16.msra.mxu1 %v2702_v56 }
 0x332   :  { %2029 = vmatprep.subr.bf16.mxu0 %v2708_v61  ;;  %2061 = vmatprep.subr.bf16.mxu1 %v2717_v7 }
 0x335   :  { %2031 = vmatpush1.bf16.msra.mxu0 %v2715_v6  ;;  %2063 = vmatpush1.bf16.msra.mxu1 %v2721_v11 }
 0x336   :  { %2065 = vmatprep.subr.bf16.mxu0 %v2584_v21  ;;  %2097 = vmatprep.subr.bf16.mxu1 %v2588_v26 }
 0x3eb   :  { %v861_v58 = vpop.f32.mrb[6].mxu0  ;;  %v932_v57 = vpop.f32.mrb[6].mxu1 }
 0x3ec   :  { %v2284_v10 = vadd.f32 %v861_v58, %v2741_v20  ;;  %v863_v12 = vpop.f32.mrb[7].mxu0  ;;  %v934_v16 = vpop.f32.mrb[7].mxu1  ;;  %v2298_v28 = vadd.f32 %v932_v57, %v2745_v24 }
 0x3ed   :  { %v2285_v19 = vadd.f32 %v863_v12, %v2792_v8  ;;  %v2299_v30 = vadd.f32 %v934_v16, %v2749_v35 }
 0x3ee   :  { %v941_v22 = vmul.f32 0.5, %v2284_v10 }
 0x3ef   :  { %v945_v27 = vmul.f32 0.5, %v2285_v19  ;;  %v950_v34 = vmul.f32 0.5, %v2299_v30 }
 0x3f0   :  { %2373 = vtanh.f32 %v941_v22 }
 0x3f1   :  { %2375 = vtanh.f32 %v945_v27 }
 0x3f2   :  { %2377 = vtanh.f32 %v2298_v28 }
 0x3f3   :  { %2379 = vtanh.f32 %v950_v34 }
 0x3fa   :  { %v2374_v13 = vpop.eup %2373 }
 0x3fb   :  { %v2376_v37 = vpop.eup %2375  ;;  %v943_v17 = vmul.f32 0.5, %v2374_v13 }
 0x3fc   :  { %v947_v40 = vmul.f32 0.5, %v2376_v37  ;;  %v2378_v44 = vpop.eup %2377 }
 0x3fd   :  { %v944_v41 = vadd.f32 0.5, %v943_v17  ;;  %v2380_v60 = vpop.eup %2379 }
 0x3fe   :  { %v948_v45 = vadd.f32 0.5, %v947_v40  ;;  %v952_v62 = vmul.f32 0.5, %v2380_v60 }
 0x3ff   :  { %v955_v47 = vmul.f32 %v2378_v44, %v944_v41 }
 0x400   :  { %v954_v48 = vmul.f32 %v948_v45, %v2841_v54  ;;  %v953_v63 = vadd.f32 0.5, %v952_v62 }
 0x402   :  { %v2883_v53 = vadd.f32 %v955_v47, %v954_v48 }
 0x404   :  { %2381 = vtanh.f32 %v2883_v53 }
 0x40e   :  { %v2382_v3 = vpop.eup %2381 }
 0x40f   :  { %v958_v4 = vmul.f32 %v2382_v3, %v953_v63 }
 0x411   :  { %1028 = vmatmul.mubr.f32.vlgmr.msra.gmra.mrb[8].mxu0 %v958_v4  ;;  %1099 = vmatmul.mubr.f32.vlgmr.msra.gmra.mrb[8].mxu1 %v958_v4 }
 0x412   :  { %2067 = vmatpush1.bf16.msra.mxu0 %v2586_v25  ;;  %2099 = vmatpush1.bf16.msra.mxu1 %v2591_v29 }
 0x413   :  { %2069 = vmatprep.subr.bf16.mxu0 %v2596_v33  ;;  %2101 = vmatprep.subr.bf16.mxu1 %v2603_v39 }
 0x414   :  { %1195 = vmatprep.mubr.f32.mxu0 %v2477_v0  ;;  %1266 = vmatprep.mubr.f32.mxu1 %v2477_v0 }
 0x416   :  { %2071 = vmatpush1.bf16.msra.mxu0 %v2601_v38  ;;  %2103 = vmatpush1.bf16.msra.mxu1 %v2607_v42 }
 0x417   :  { %2073 = vmatprep.subr.bf16.mxu0 %v2613_v46  ;;  %2105 = vmatprep.subr.bf16.mxu1 %v2622_v52 }
 0x41a   :  { %2075 = vmatpush1.bf16.msra.mxu0 %v2620_v51  ;;  %2107 = vmatpush1.bf16.msra.mxu1 %v2626_v55 }
 0x41b   :  { %2077 = vmatprep.subr.bf16.mxu0 %v2632_v59  ;;  %2109 = vmatprep.subr.bf16.mxu1 %v2641_v2 }
 0x41e   :  { %2079 = vmatpush1.bf16.msra.mxu0 %v2639_v1  ;;  %2111 = vmatpush1.bf16.msra.mxu1 %v2645_v5 }
 0x41f   :  { %2081 = vmatprep.subr.bf16.mxu0 %v2651_v9  ;;  %2113 = vmatprep.subr.bf16.mxu1 %v2660_v15 }
 0x422   :  { %2083 = vmatpush1.bf16.msra.mxu0 %v2658_v14  ;;  %2115 = vmatpush1.bf16.msra.mxu1 %v2664_v18 }
 0x423   :  { %2085 = vmatprep.subr.bf16.mxu0 %v2670_v23  ;;  %2117 = vmatprep.subr.bf16.mxu1 %v2679_v32 }
 0x426   :  { %2087 = vmatpush1.bf16.msra.mxu0 %v2677_v31  ;;  %2119 = vmatpush1.bf16.msra.mxu1 %v2683_v36 }
 0x427   :  { %2089 = vmatprep.subr.bf16.mxu0 %v2689_v43  ;;  %2121 = vmatprep.subr.bf16.mxu1 %v2698_v50 }
 0x42a   :  { %2091 = vmatpush1.bf16.msra.mxu0 %v2696_v49  ;;  %2123 = vmatpush1.bf16.msra.mxu1 %v2702_v56 }
 0x42b   :  { %2093 = vmatprep.subr.bf16.mxu0 %v2708_v61  ;;  %2125 = vmatprep.subr.bf16.mxu1 %v2717_v7 }
 0x42e   :  { %2095 = vmatpush1.bf16.msra.mxu0 %v2715_v6  ;;  %2127 = vmatpush1.bf16.msra.mxu1 %v2721_v11 }
 0x42f   :  { %2129 = vmatprep.subr.bf16.mxu0 %v2584_v21  ;;  %2161 = vmatprep.subr.bf16.mxu1 %v2588_v26 }
 0x4e4   :  { %v1029_v54 = vpop.f32.mrb[8].mxu0  ;;  %v1100_v58 = vpop.f32.mrb[8].mxu1 }
 0x4e5   :  { %v2286_v57 = vadd.f32 %v1029_v54, %v2741_v20  ;;  %v1031_v10 = vpop.f32.mrb[9].mxu0  ;;  %v1102_v12 = vpop.f32.mrb[9].mxu1  ;;  %v2300_v27 = vadd.f32 %v1100_v58, %v2745_v24 }
 0x4e6   :  { %v2287_v16 = vadd.f32 %v1031_v10, %v2792_v8  ;;  %v2301_v28 = vadd.f32 %v1102_v12, %v2749_v35 }
 0x4e7   :  { %v1109_v19 = vmul.f32 0.5, %v2286_v57 }
 0x4e8   :  { %v1113_v22 = vmul.f32 0.5, %v2287_v16  ;;  %v1118_v30 = vmul.f32 0.5, %v2301_v28 }
 0x4e9   :  { %2383 = vtanh.f32 %v1109_v19 }
 0x4ea   :  { %2385 = vtanh.f32 %v1113_v22 }
 0x4eb   :  { %2387 = vtanh.f32 %v2300_v27 }
 0x4ec   :  { %2389 = vtanh.f32 %v1118_v30 }
 0x4f3   :  { %v2384_v34 = vpop.eup %2383 }
 0x4f4   :  { %v2386_v13 = vpop.eup %2385  ;;  %v1111_v37 = vmul.f32 0.5, %v2384_v34 }
 0x4f5   :  { %v1115_v17 = vmul.f32 0.5, %v2386_v13  ;;  %v2388_v41 = vpop.eup %2387 }
 0x4f6   :  { %v1112_v40 = vadd.f32 0.5, %v1111_v37  ;;  %v2390_v60 = vpop.eup %2389 }
 0x4f7   :  { %v1116_v44 = vadd.f32 0.5, %v1115_v17  ;;  %v1120_v62 = vmul.f32 0.5, %v2390_v60 }
 0x4f8   :  { %v1123_v45 = vmul.f32 %v2388_v41, %v1112_v40 }
 0x4f9   :  { %v1122_v47 = vmul.f32 %v1116_v44, %v2883_v53  ;;  %v1121_v63 = vadd.f32 0.5, %v1120_v62 }
 0x4fb   :  { %v2925_v48 = vadd.f32 %v1123_v45, %v1122_v47 }
 0x4fd   :  { %2391 = vtanh.f32 %v2925_v48 }
 0x507   :  { %v2392_v3 = vpop.eup %2391 }
 0x508   :  { %v1126_v4 = vmul.f32 %v2392_v3, %v1121_v63  ;;  %v1634_v3 = vld [vmem:[#allocation5 + $0x18] sm:$0xff] }
 0x50a   :  { %1196 = vmatmul.mubr.f32.vlgmr.msra.gmra.mrb[10].mxu0 %v1126_v4  ;;  %1267 = vmatmul.mubr.f32.vlgmr.msra.gmra.mrb[10].mxu1 %v1126_v4 }
 0x50b   :  { %2131 = vmatpush1.bf16.msra.mxu0 %v2586_v25  ;;  %2163 = vmatpush1.bf16.msra.mxu1 %v2591_v29 }
 0x50c   :  { %2133 = vmatprep.subr.bf16.mxu0 %v2596_v33  ;;  %2165 = vmatprep.subr.bf16.mxu1 %v2603_v39 }
 0x50d   :  { %1363 = vmatprep.mubr.f32.mxu0 %v2477_v0  ;;  %1434 = vmatprep.mubr.f32.mxu1 %v2477_v0 }
 0x50f   :  { %2135 = vmatpush1.bf16.msra.mxu0 %v2601_v38  ;;  %2167 = vmatpush1.bf16.msra.mxu1 %v2607_v42 }
 0x510   :  { %2137 = vmatprep.subr.bf16.mxu0 %v2613_v46  ;;  %2169 = vmatprep.subr.bf16.mxu1 %v2622_v52 }
 0x513   :  { %2139 = vmatpush1.bf16.msra.mxu0 %v2620_v51  ;;  %2171 = vmatpush1.bf16.msra.mxu1 %v2626_v55 }
 0x514   :  { %2141 = vmatprep.subr.bf16.mxu0 %v2632_v59  ;;  %2173 = vmatprep.subr.bf16.mxu1 %v2641_v2 }
 0x517   :  { %2143 = vmatpush1.bf16.msra.mxu0 %v2639_v1  ;;  %2175 = vmatpush1.bf16.msra.mxu1 %v2645_v5 }
 0x518   :  { %2145 = vmatprep.subr.bf16.mxu0 %v2651_v9  ;;  %2177 = vmatprep.subr.bf16.mxu1 %v2660_v15 }
 0x51b   :  { %2147 = vmatpush1.bf16.msra.mxu0 %v2658_v14  ;;  %2179 = vmatpush1.bf16.msra.mxu1 %v2664_v18 }
 0x51c   :  { %2149 = vmatprep.subr.bf16.mxu0 %v2670_v23  ;;  %2181 = vmatprep.subr.bf16.mxu1 %v2679_v32 }
 0x51f   :  { %2151 = vmatpush1.bf16.msra.mxu0 %v2677_v31  ;;  %2183 = vmatpush1.bf16.msra.mxu1 %v2683_v36 }
 0x520   :  { %2153 = vmatprep.subr.bf16.mxu0 %v2689_v43  ;;  %2185 = vmatprep.subr.bf16.mxu1 %v2698_v50 }
 0x523   :  { %2155 = vmatpush1.bf16.msra.mxu0 %v2696_v49  ;;  %2187 = vmatpush1.bf16.msra.mxu1 %v2702_v56 }
 0x524   :  { %2157 = vmatprep.subr.bf16.mxu0 %v2708_v61  ;;  %2189 = vmatprep.subr.bf16.mxu1 %v2717_v7 }
 0x527   :  { %2159 = vmatpush1.bf16.msra.mxu0 %v2715_v6  ;;  %2191 = vmatpush1.bf16.msra.mxu1 %v2721_v11 }
 0x528   :  { %2193 = vmatprep.subr.bf16.mxu0 %v2584_v21  ;;  %2225 = vmatprep.subr.bf16.mxu1 %v2588_v26 }
 0x5dd   :  { %v1197_v53 = vpop.f32.mrb[10].mxu0  ;;  %v1268_v54 = vpop.f32.mrb[10].mxu1 }
 0x5de   :  { %v2288_v58 = vadd.f32 %v1197_v53, %v2741_v20  ;;  %v1199_v57 = vpop.f32.mrb[11].mxu0  ;;  %v1270_v10 = vpop.f32.mrb[11].mxu1  ;;  %v2302_v22 = vadd.f32 %v1268_v54, %v2745_v24  ;;  %v1635_v53 = vld [vmem:[#allocation5 + $0x20] sm:$0xff]  ;;  %v1636_v54 = vld [vmem:[#allocation5 + $0x28] sm:$0xff] }
 0x5df   :  { %v2289_v12 = vadd.f32 %v1199_v57, %v2792_v8  ;;  %v2303_v27 = vadd.f32 %v1270_v10, %v2749_v35  ;;  %v1637_v57 = vld [vmem:[#allocation5 + $0x30] sm:$0xff]  ;;  %v1638_v10 = vld [vmem:[#allocation5 + $0x38] sm:$0xff] }
 0x5e0   :  { %v1277_v16 = vmul.f32 0.5, %v2288_v58  ;;  %v2263_v58 = vpack.c.bf16 %v1636_v54, %v1635_v53 }
 0x5e1   :  { %v1281_v19 = vmul.f32 0.5, %v2289_v12  ;;  %v1286_v21 = vmul.f32 0.5, %v2303_v27  ;;  %v2266_v12 = vpack.c.bf16 %v1638_v10, %v1637_v57  ;;  %v1641_v27 = vld [vmem:[#allocation5 + $0x50] sm:$0xff] }
 0x5e2   :  { %2393 = vtanh.f32 %v1277_v16  ;;  %v1639_v16 = vld [vmem:[#allocation5 + $0x40] sm:$0xff] }
 0x5e3   :  { %2395 = vtanh.f32 %v1281_v19  ;;  %v1640_v19 = vld [vmem:[#allocation5 + $0x48] sm:$0xff] }
 0x5e4   :  { %2397 = vtanh.f32 %v2302_v22  ;;  %v2269_v22 = vpack.c.bf16 %v1640_v19, %v1639_v16 }
 0x5e5   :  { %2399 = vtanh.f32 %v1286_v21  ;;  %v1642_v21 = vld [vmem:[#allocation5 + $0x58] sm:$0xff] }
 0x5ec   :  { %v2394_v28 = vpop.eup %2393 }
 0x5ed   :  { %v2396_v26 = vpop.eup %2395  ;;  %v1279_v30 = vmul.f32 0.5, %v2394_v28  ;;  %v2272_v28 = vpack.c.bf16 %v1642_v21, %v1641_v27 }
 0x5ee   :  { %v1283_v34 = vmul.f32 0.5, %v2396_v26  ;;  %v2398_v37 = vpop.eup %2397  ;;  %v1643_v26 = vld [vmem:[#allocation5 + $0x60] sm:$0xff] }
 0x5ef   :  { %v1280_v13 = vadd.f32 0.5, %v1279_v30  ;;  %v2400_v45 = vpop.eup %2399  ;;  %v1644_v30 = vld [vmem:[#allocation5 + $0x68] sm:$0xff] }
 0x5f0   :  { %v1284_v17 = vadd.f32 0.5, %v1283_v34  ;;  %v1288_v47 = vmul.f32 0.5, %v2400_v45  ;;  %v2275_v34 = vpack.c.bf16 %v1644_v30, %v1643_v26 }
 0x5f1   :  { %v1291_v40 = vmul.f32 %v2398_v37, %v1280_v13  ;;  %v1645_v13 = vld [vmem:[#allocation5 + $0x70] sm:$0xff]  ;;  %v1646_v37 = vld [vmem:[#allocation5 + $0x78] sm:$0xff] }
 0x5f2   :  { %v1290_v41 = vmul.f32 %v1284_v17, %v2925_v48  ;;  %v1289_v60 = vadd.f32 0.5, %v1288_v47  ;;  %v1633_v48 = vld [vmem:[#allocation5 + $0x10] sm:$0xff]  ;;  %v2278_v17 = vpack.c.bf16 %v1646_v37, %v1645_v13 }
 0x5f3   :  { %v2260_v4 = vpack.c.bf16 %v1634_v3, %v1633_v48 }
 0x5f4   :  { %v2967_v44 = vadd.f32 %v1291_v40, %v1290_v41 }
 0x5f6   :  { %2401 = vtanh.f32 %v2967_v44 }
 0x600   :  { %v2402_v62 = vpop.eup %2401 }
 0x601   :  { %v1294_v63 = vmul.f32 %v2402_v62, %v1289_v60 }
 0x603   :  { %1364 = vmatmul.mubr.f32.vlgmr.msra.gmra.mrb[12].mxu0 %v1294_v63  ;;  %1435 = vmatmul.mubr.f32.vlgmr.msra.gmra.mrb[12].mxu1 %v1294_v63 }
 0x604   :  { %2195 = vmatpush1.bf16.msra.mxu0 %v2586_v25  ;;  %2227 = vmatpush1.bf16.msra.mxu1 %v2591_v29 }
 0x605   :  { %2197 = vmatprep.subr.bf16.mxu0 %v2596_v33  ;;  %2229 = vmatprep.subr.bf16.mxu1 %v2603_v39 }
 0x606   :  { %1531 = vmatprep.mubr.f32.mxu0 %v2477_v0  ;;  %1602 = vmatprep.mubr.f32.mxu1 %v2477_v0 }
 0x608   :  { %2199 = vmatpush1.bf16.msra.mxu0 %v2601_v38  ;;  %2231 = vmatpush1.bf16.msra.mxu1 %v2607_v42 }
 0x609   :  { %2201 = vmatprep.subr.bf16.mxu0 %v2613_v46  ;;  %2233 = vmatprep.subr.bf16.mxu1 %v2622_v52 }
 0x60c   :  { %2203 = vmatpush1.bf16.msra.mxu0 %v2620_v51  ;;  %2235 = vmatpush1.bf16.msra.mxu1 %v2626_v55 }
 0x60d   :  { %2205 = vmatprep.subr.bf16.mxu0 %v2632_v59  ;;  %2237 = vmatprep.subr.bf16.mxu1 %v2641_v2 }
 0x610   :  { %2207 = vmatpush1.bf16.msra.mxu0 %v2639_v1  ;;  %2239 = vmatpush1.bf16.msra.mxu1 %v2645_v5 }
 0x611   :  { %2209 = vmatprep.subr.bf16.mxu0 %v2651_v9  ;;  %2241 = vmatprep.subr.bf16.mxu1 %v2660_v15 }
 0x614   :  { %2211 = vmatpush1.bf16.msra.mxu0 %v2658_v14  ;;  %2243 = vmatpush1.bf16.msra.mxu1 %v2664_v18 }
 0x615   :  { %2213 = vmatprep.subr.bf16.mxu0 %v2670_v23  ;;  %2245 = vmatprep.subr.bf16.mxu1 %v2679_v32 }
 0x618   :  { %2215 = vmatpush1.bf16.msra.mxu0 %v2677_v31  ;;  %2247 = vmatpush1.bf16.msra.mxu1 %v2683_v36 }
 0x619   :  { %2217 = vmatprep.subr.bf16.mxu0 %v2689_v43  ;;  %2249 = vmatprep.subr.bf16.mxu1 %v2698_v50 }
 0x61c   :  { %2219 = vmatpush1.bf16.msra.mxu0 %v2696_v49  ;;  %2251 = vmatpush1.bf16.msra.mxu1 %v2702_v56 }
 0x61d   :  { %2221 = vmatprep.subr.bf16.mxu0 %v2708_v61  ;;  %2253 = vmatprep.subr.bf16.mxu1 %v2717_v7  ;;  %v1631_v61 = vld [vmem:[#allocation5] sm:$0xff] }
 0x620   :  { %2223 = vmatpush1.bf16.msra.mxu0 %v2715_v6  ;;  %2255 = vmatpush1.bf16.msra.mxu1 %v2721_v11  ;;  %v1632_v6 = vld [vmem:[#allocation5 + $0x8] sm:$0xff]  ;;  %v2478_v11 = vmov 0.0|0.0  }
 0x621   :  { %v2257_v7 = vpack.c.bf16 %v1632_v6, %v1631_v61  ;;  %2256 = vmatprep.subr.bf16.mxu0 %v2478_v11 }
 0x6d6   :  { %v1365_v25 = vpop.f32.mrb[12].mxu0  ;;  %v1436_v29 = vpop.f32.mrb[12].mxu1 }
 0x6d7   :  { %v2290_v33 = vadd.f32 %v1365_v25, %v2741_v20  ;;  %v1367_v38 = vpop.f32.mrb[13].mxu0  ;;  %v1438_v39 = vpop.f32.mrb[13].mxu1  ;;  %v2304_v52 = vadd.f32 %v1436_v29, %v2745_v24 }
 0x6d8   :  { %v2291_v42 = vadd.f32 %v1367_v38, %v2792_v8  ;;  %v2305_v55 = vadd.f32 %v1438_v39, %v2749_v35 }
 0x6d9   :  { %v1445_v46 = vmul.f32 0.5, %v2290_v33 }
 0x6da   :  { %v1449_v51 = vmul.f32 0.5, %v2291_v42  ;;  %v1454_v59 = vmul.f32 0.5, %v2305_v55 }
 0x6db   :  { %2403 = vtanh.f32 %v1445_v46 }
 0x6dc   :  { %2405 = vtanh.f32 %v1449_v51 }
 0x6dd   :  { %2407 = vtanh.f32 %v2304_v52 }
 0x6de   :  { %2409 = vtanh.f32 %v1454_v59 }
 0x6e5   :  { %v2404_v1 = vpop.eup %2403 }
 0x6e6   :  { %v2406_v2 = vpop.eup %2405  ;;  %v1447_v5 = vmul.f32 0.5, %v2404_v1 }
 0x6e7   :  { %v1451_v9 = vmul.f32 0.5, %v2406_v2  ;;  %v2408_v15 = vpop.eup %2407 }
 0x6e8   :  { %v1448_v14 = vadd.f32 0.5, %v1447_v5  ;;  %v2410_v36 = vpop.eup %2409 }
 0x6e9   :  { %v1452_v18 = vadd.f32 0.5, %v1451_v9  ;;  %v1456_v43 = vmul.f32 0.5, %v2410_v36 }
 0x6ea   :  { %v1459_v23 = vmul.f32 %v2408_v15, %v1448_v14 }
 0x6eb   :  { %v1458_v31 = vmul.f32 %v1452_v18, %v2967_v44  ;;  %v1457_v49 = vadd.f32 0.5, %v1456_v43 }
 0x6ed   :  { %v3007_v32 = vadd.f32 %v1459_v23, %v1458_v31 }
 0x6ef   :  { %2411 = vtanh.f32 %v3007_v32 }
 0x6f9   :  { %v2412_v50 = vpop.eup %2411 }
 0x6fa   :  { %v1462_v56 = vmul.f32 %v2412_v50, %v1457_v49 }
 0x6fc   :  { %1532 = vmatmul.mubr.f32.vlgmr.msra.gmra.mrb[14].mxu0 %v1462_v56  ;;  %1603 = vmatmul.mubr.f32.vlgmr.msra.gmra.mrb[14].mxu1 %v1462_v56 }
 0x6fd   :  { %2258 = vmatpush3.bf16.msra.mxu0 %v2257_v7  ;;  %1797 = vmatprep.mubr.msk.f32.mxu0 %vm2479_vm1, %v2477_v0 }
 0x6fe   :  { %2259 = vmatprep.subr.bf16.mxu0 %v2478_v11 }
 0x701   :  { %2261 = vmatpush3.bf16.msra.mxu0 %v2260_v4 }
 0x702   :  { %2262 = vmatprep.subr.bf16.mxu0 %v2478_v11 }
 0x705   :  { %2264 = vmatpush3.bf16.msra.mxu0 %v2263_v58 }
 0x706   :  { %2265 = vmatprep.subr.bf16.mxu0 %v2478_v11 }
 0x709   :  { %2267 = vmatpush3.bf16.msra.mxu0 %v2266_v12 }
 0x70a   :  { %2268 = vmatprep.subr.bf16.mxu0 %v2478_v11 }
 0x70d   :  { %2270 = vmatpush3.bf16.msra.mxu0 %v2269_v22 }
 0x70e   :  { %2271 = vmatprep.subr.bf16.mxu0 %v2478_v11 }
 0x711   :  { %2273 = vmatpush3.bf16.msra.mxu0 %v2272_v28 }
 0x712   :  { %2274 = vmatprep.subr.bf16.mxu0 %v2478_v11 }
 0x715   :  { %2276 = vmatpush3.bf16.msra.mxu0 %v2275_v34 }
 0x716   :  { %2277 = vmatprep.subr.bf16.mxu0 %v2478_v11 }
 0x719   :  { %2279 = vmatpush3.bf16.msra.mxu0 %v2278_v17 }
 0x7cf   :  { %v1533_v40 = vpop.f32.mrb[14].mxu0  ;;  %v1604_v41 = vpop.f32.mrb[14].mxu1 }
 0x7d0   :  { %v2292_v44 = vadd.f32 %v1533_v40, %v2741_v20  ;;  %v1535_v45 = vpop.f32.mrb[15].mxu0  ;;  %v1606_v47 = vpop.f32.mrb[15].mxu1  ;;  %v2306_v25 = vadd.f32 %v1604_v41, %v2745_v24 }
 0x7d1   :  { %v2293_v60 = vadd.f32 %v1535_v45, %v2792_v8  ;;  %v2307_v29 = vadd.f32 %v1606_v47, %v2749_v35  ;;  %v1747_v35 = vld [vmem:[%s3027_s5] ss:$0 sm:$0xff] }
 0x7d2   :  { %v1613_v62 = vmul.f32 0.5, %v2292_v44 }
 0x7d3   :  { %v1617_v63 = vmul.f32 0.5, %v2293_v60  ;;  %v1622_v33 = vmul.f32 0.5, %v2307_v29 }
 0x7d4   :  { %2413 = vtanh.f32 %v1613_v62 }
 0x7d5   :  { %2415 = vtanh.f32 %v1617_v63 }
 0x7d6   :  { %2417 = vtanh.f32 %v2306_v25 }
 0x7d7   :  { %2419 = vtanh.f32 %v1622_v33 }
 0x7de   :  { %v2414_v38 = vpop.eup %2413 }
 0x7df   :  { %v2416_v0 = vpop.eup %2415  ;;  %v1615_v39 = vmul.f32 0.5, %v2414_v38 }
 0x7e0   :  { %v1619_v42 = vmul.f32 0.5, %v2416_v0  ;;  %v2418_v46 = vpop.eup %2417 }
 0x7e1   :  { %v1616_v20 = vadd.f32 0.5, %v1615_v39  ;;  %v2420_v59 = vpop.eup %2419 }
 0x7e2   :  { %v1620_v51 = vadd.f32 0.5, %v1619_v42  ;;  %v1624_v24 = vmul.f32 0.5, %v2420_v59 }
 0x7e3   :  { %v1627_v52 = vmul.f32 %v2418_v46, %v1616_v20 }
 0x7e4   :  { %v1626_v8 = vmul.f32 %v1620_v51, %v3007_v32  ;;  %v1625_v1 = vadd.f32 0.5, %v1624_v24 }
 0x7e6   :  { %v1628_v55 = vadd.f32 %v1627_v52, %v1626_v8 }
 0x7e8   :  { %2421 = vtanh.f32 %v1628_v55 }
 0x7f2   :  { %v2422_v2 = vpop.eup %2421 }
 0x7f3   :  { %v1630_v5 = vmul.f32 %v2422_v2, %v1625_v1 }
 0x7f5   :  { %1798 = vmatmul.mubr.f32.vlgmr.msra.gmra.mrb[16].mxu0 %v1630_v5 }
 0x8c8   :  { %v1720_v9 = vpop.f32.mrb[16].mxu0 }
 0x8c9   :  { %v1721_v14 = vadd.f32 %v1747_v35, %v1720_v9  ;;  %v1799_v15 = vpop.f32.mrb[17].mxu0 }
 0x8cb   :  { %1724 = vst [vmem:[%s3028_s6] sm:$0xff] %v1721_v14 }
 0x8cc   :  { %1729 = vsyncpa [#allocation4], 1 }
 0x8cd   :  { %1730 = vsyncpa [#allocation6], 1 }

</bundles_post_ra>
